<compile_context>
chip_gen: v7x
topology: tpu7x:2x2x1
jax: 0.10.0
libtpu: 0.0.40
codegen_flags: <defaults>
</compile_context>

<pallas_src>
import functools

import jax
import jax.numpy as jnp
from jax import lax
from jax.experimental import pallas as pl
from jax.experimental.pallas import tpu as pltpu


# Leave headroom below v7x's 64 MiB physical VMEM per TensorCore.
_VMEM_LIMIT = 48 * 1024 * 1024


# --------------------------- in-kernel conv helpers ------------------------- #

def _conv_taps(read_wslice, w_ref, b_ref, xw_ref, H, W, Cin):
    """3x3 conv with the width taps folded into the MXU contraction dim.

    read_wslice(dx) -> (Hp, W, Cin) bf16 slice of the zero-padded source,
                       shifted by dx along width (dx = 0, 1, 2; static).
    w_ref : Ref (3, 3*Cin, Cout) bf16, indexed as w[ky, kx*Cin + ci, co]
    b_ref : Ref (1, Cout) f32
    xw_ref: VMEM scratch (Hp, W, 3*Cin) bf16  (width-unrolled patch)
    returns (H*W, Cout) f32  (conv + bias)
    """
    # Build the width-unrolled patch once: 3 shifted copies instead of 9.
    # TODO(synk): build via one aligned copy + pltpu.roll shifts at real config.
    for dx in range(3):
        xw_ref[:, :, dx * Cin:(dx + 1) * Cin] = read_wslice(dx)

    acc = None
    for dy in range(3):
        patch = xw_ref[dy:dy + H, :, :].reshape(H * W, 3 * Cin)
        part = jnp.dot(patch, w_ref[dy], preferred_element_type=jnp.float32)
        acc = part if acc is None else acc + part   # init from first matmul
    return acc + b_ref[0]


def _zero_halo(ref, *lead):
    """Zero only the 1-pixel halo strips of a (..., Hp, Wp, C) ref (no full-tile
    zero + interior overwrite)."""
    Hp, Wp, C = ref.shape[len(lead):]
    all_ = slice(None)
    ref[(*lead, slice(0, 1), all_, all_)] = jnp.zeros((1, Wp, C), ref.dtype)
    ref[(*lead, slice(Hp - 1, Hp), all_, all_)] = jnp.zeros((1, Wp, C), ref.dtype)
    ref[(*lead, all_, slice(0, 1), all_)] = jnp.zeros((Hp, 1, C), ref.dtype)
    ref[(*lead, all_, slice(Wp - 1, Wp), all_)] = jnp.zeros((Hp, 1, C), ref.dtype)


# ------------------------------ Pallas kernels ------------------------------ #

def _conv3x3_kernel(x_ref, w_ref, b_ref, o_ref, xw_ref):
    """Single 3x3 conv (+bias) on one halo-padded NHWC image; halo-padded out."""
    _, Hp, Wp, Cin = x_ref.shape
    H, W = Hp - 2, Wp - 2
    Cout = w_ref.shape[-1]

    acc = _conv_taps(lambda dx: x_ref[0, :, dx:dx + W, :],
                     w_ref, b_ref, xw_ref, H, W, Cin)
    _zero_halo(o_ref, 0)
    o_ref[0, 1:H + 1, 1:W + 1, :] = acc.reshape(H, W, Cout).astype(o_ref.dtype)


def _trunk_block_kernel(x_ref, w1_ref, b1_ref, w2_ref, b2_ref, o_ref,
                        xw_ref, tpad_ref):
    """One fused ResidualBlock step of the trunk (grid axis 1 = block index).

    The running activation lives in o_ref (resident VMEM, written to HBM only
    once per image); the intermediate conv1 activation lives in tpad_ref.
    """
    _, Hp, Wp, C = x_ref.shape
    H, W = Hp - 2, Wp - 2
    blk = pl.program_id(1)

    @pl.when(blk == 0)
    def _():
        # Bring the trunk input (zero halo included) into the resident VMEM
        # activation and zero the intermediate scratch's halo once per image.
        o_ref[...] = x_ref[...]
        _zero_halo(tpad_ref)

    # conv1 + bias + ReLU -> tpad interior (bf16; never leaves VMEM).
    a1 = _conv_taps(lambda dx: o_ref[0, :, dx:dx + W, :],
                    w1_ref, b1_ref, xw_ref, H, W, C)
    tpad_ref[1:H + 1, 1:W + 1, :] = (
        jnp.maximum(a1, 0.0).astype(jnp.bfloat16).reshape(H, W, C))

    # conv2 + bias, then residual add (after conv2, matching PyTorch).
    a2 = _conv_taps(lambda dx: tpad_ref[:, dx:dx + W, :],
                    w2_ref, b2_ref, xw_ref, H, W, C)
    y = a2.reshape(H, W, C) + o_ref[0, 1:H + 1, 1:W + 1, :].astype(jnp.float32)
    o_ref[0, 1:H + 1, 1:W + 1, :] = y.astype(o_ref.dtype)


def _subpixel_kernel(x_ref, w_ref, b_ref, o_ref, xw_ref, *, r):
    """conv (C -> C*r*r) with PixelShuffle + 1px zero pad fused into the store.

    Output is phase-split: o[0, i*r+j, 1+h, 1+w, :] = shuffled[h*r+i, w*r+j, :],
    each phase sub-image carrying its own zero halo, so the upscaled activation
    never makes an HBM round trip through JAX reshape/transpose/pad.
    Weights are pre-permuted so each phase's channels are contiguous.
    """
    _, Hp, Wp, C = x_ref.shape
    H, W = Hp - 2, Wp - 2
    Cout = o_ref.shape[-1]

    acc = _conv_taps(lambda dx: x_ref[0, :, dx:dx + W, :],
                     w_ref, b_ref, xw_ref, H, W, C)
    y = acc.reshape(H, W, r * r * Cout).astype(o_ref.dtype)

    for p in range(r * r):
        _zero_halo(o_ref, 0, p)
        o_ref[0, p, 1:H + 1, 1:W + 1, :] = y[:, :, p * Cout:(p + 1) * Cout]


def _output_conv_kernel(x_ref, w_ref, b_ref, o_ref, *, r):
    """Final 3x3 conv (C -> 1) consuming the phase-split upscaled activation.

    x_ref: (1, r*r, H+2, W+2, C) bf16 per-phase zero-haloed sub-images.
    w_ref: (9, C, 1) bf16 (tap-major), b_ref: (1, 1) f32.
    o_ref: (1, r, r, H, W, 1) f32 phase-split output; the tiny 1-channel
           interleave back to NCHW is done in JAX.
    TODO(synk): emit a lane-dense (N,1,H*r,W*r) NCHW store directly.
    """
    _, _, Hp, Wp, C = x_ref.shape
    H, W = Hp - 2, Wp - 2

    for io in range(r):
        for jo in range(r):
            acc = None
            for dy in range(3):
                oh, i_s = divmod(io + dy - 1, r)
                for dx in range(3):
                    ow, j_s = divmod(jo + dx - 1, r)
                    patch = x_ref[0, i_s * r + j_s,
                                  1 + oh:1 + oh + H,
                                  1 + ow:1 + ow + W, :].reshape(H * W, C)
                    part = jnp.dot(patch, w_ref[dy * 3 + dx],
                                   preferred_element_type=jnp.float32)
                    acc = part if acc is None else acc + part
            out = (acc + b_ref[0]).reshape(H, W, 1)
            o_ref[0, io, jo, :, :, :] = out.astype(o_ref.dtype)


# ------------------------------ Pallas wrappers ----------------------------- #

def conv3x3(x_pad, w, b):
    """x_pad: (N, H+2, W+2, Cin) bf16 with zero halo ->
       (N, H+2, W+2, Cout) bf16 with zero halo."""
    N, Hp, Wp, Cin = x_pad.shape
    H, W = Hp - 2, Wp - 2
    Cout = w.shape[-1]
    return pl.pallas_call(
        _conv3x3_kernel,
        out_shape=jax.ShapeDtypeStruct((N, Hp, Wp, Cout), jnp.bfloat16),
        grid_spec=pltpu.PrefetchScalarGridSpec(
            num_scalar_prefetch=0,
            grid=(N,),
            in_specs=[
                pl.BlockSpec((1, Hp, Wp, Cin), lambda n: (n, 0, 0, 0)),
                pl.BlockSpec((3, 3 * Cin, Cout), lambda n: (0, 0, 0)),
                pl.BlockSpec((1, Cout), lambda n: (0, 0)),
            ],
            out_specs=pl.BlockSpec((1, Hp, Wp, Cout), lambda n: (n, 0, 0, 0)),
            scratch_shapes=[pltpu.VMEM((Hp, W, 3 * Cin), jnp.bfloat16)],
        ),
        compiler_params=pltpu.CompilerParams(
            dimension_semantics=("parallel",),
            vmem_limit_bytes=_VMEM_LIMIT),
    )(x_pad, w, b)


def residual_trunk(x_pad, w1s, b1s, w2s, b2s):
    """All residual blocks in one pallas_call; activation resident in VMEM."""
    N, Hp, Wp, C = x_pad.shape
    H, W = Hp - 2, Wp - 2
    NB = w1s.shape[0]
    return pl.pallas_call(
        _trunk_block_kernel,
        out_shape=jax.ShapeDtypeStruct((N, Hp, Wp, C), jnp.bfloat16),
        grid_spec=pltpu.PrefetchScalarGridSpec(
            num_scalar_prefetch=0,
            grid=(N, NB),
            in_specs=[
                pl.BlockSpec((1, Hp, Wp, C), lambda n, k: (n, 0, 0, 0)),
                pl.BlockSpec((None, 3, 3 * C, C), lambda n, k: (k, 0, 0, 0)),
                pl.BlockSpec((None, 1, C), lambda n, k: (k, 0, 0)),
                pl.BlockSpec((None, 3, 3 * C, C), lambda n, k: (k, 0, 0, 0)),
                pl.BlockSpec((None, 1, C), lambda n, k: (k, 0, 0)),
            ],
            out_specs=pl.BlockSpec((1, Hp, Wp, C), lambda n, k: (n, 0, 0, 0)),
            scratch_shapes=[pltpu.VMEM((Hp, W, 3 * C), jnp.bfloat16),
                            pltpu.VMEM((Hp, Wp, C), jnp.bfloat16)],
        ),
        compiler_params=pltpu.CompilerParams(
            dimension_semantics=("parallel", "arbitrary"),
            vmem_limit_bytes=_VMEM_LIMIT),
    )(x_pad, w1s, b1s, w2s, b2s)


def subpixel_shuffle_conv(x_pad, w, b, r):
    """Fused subpixel conv + PixelShuffle + pad -> (N, r*r, H+2, W+2, C) bf16."""
    N, Hp, Wp, C = x_pad.shape
    H, W = Hp - 2, Wp - 2
    Crr = w.shape[-1]
    Cout = Crr // (r * r)
    kernel = functools.partial(_subpixel_kernel, r=r)
    return pl.pallas_call(
        kernel,
        out_shape=jax.ShapeDtypeStruct((N, r * r, H + 2, W + 2, Cout),
                                       jnp.bfloat16),
        grid_spec=pltpu.PrefetchScalarGridSpec(
            num_scalar_prefetch=0,
            grid=(N,),
            in_specs=[
                pl.BlockSpec((1, Hp, Wp, C), lambda n: (n, 0, 0, 0)),
                pl.BlockSpec((3, 3 * C, Crr), lambda n: (0, 0, 0)),
                pl.BlockSpec((1, Crr), lambda n: (0, 0)),
            ],
            out_specs=pl.BlockSpec((1, r * r, H + 2, W + 2, Cout),
                                   lambda n: (n, 0, 0, 0, 0)),
            scratch_shapes=[pltpu.VMEM((Hp, W, 3 * C), jnp.bfloat16)],
        ),
        compiler_params=pltpu.CompilerParams(
            dimension_semantics=("parallel",),
            vmem_limit_bytes=_VMEM_LIMIT),
    )(x_pad, w, b)


def output_conv(x_phase, w, b, r):
    """Final conv on the phase-split activation -> NCHW (N, 1, H*r, W*r) f32."""
    N, P, Hp, Wp, C = x_phase.shape
    H, W = Hp - 2, Wp - 2
    kernel = functools.partial(_output_conv_kernel, r=r)
    y = pl.pallas_call(
        kernel,
        out_shape=jax.ShapeDtypeStruct((N, r, r, H, W, 1), jnp.float32),
        grid_spec=pltpu.PrefetchScalarGridSpec(
            num_scalar_prefetch=0,
            grid=(N,),
            in_specs=[
                pl.BlockSpec((1, P, Hp, Wp, C), lambda n: (n, 0, 0, 0, 0)),
                pl.BlockSpec((9, C, 1), lambda n: (0, 0, 0)),
                pl.BlockSpec((1, 1), lambda n: (0, 0)),
            ],
            out_specs=pl.BlockSpec((1, r, r, H, W, 1),
                                   lambda n: (n, 0, 0, 0, 0, 0)),
        ),
        compiler_params=pltpu.CompilerParams(
            dimension_semantics=("parallel",),
            vmem_limit_bytes=_VMEM_LIMIT),
    )(x_phase, w, b)
    # Tiny 1-channel re-interleave back to NCHW (negligible vs C-channel tensors).
    y = jnp.transpose(y[..., 0], (0, 3, 1, 4, 2))       # (N, H, r, W, r)
    return y.reshape(N, 1, H * r, W * r)


# ------------------------------- JAX glue ----------------------------------- #

def pixel_shuffle_nhwc(x, r):
    """NHWC pixel shuffle matching torch.nn.PixelShuffle channel ordering
    (used by the plain-JAX reference only)."""
    N, H, W, Crr = x.shape
    C = Crr // (r * r)
    x = x.reshape(N, H, W, C, r, r)
    x = jnp.transpose(x, (0, 1, 4, 2, 5, 3))  # (N, H, r, W, r, C)
    return x.reshape(N, H * r, W * r, C)


def _fold_conv_params(w, b, cin_pad=0):
    """(3,3,Cin,Cout) f32 HWIO -> ((3, 3*Cin', Cout) bf16, (1, Cout) f32)."""
    if cin_pad:
        w = jnp.pad(w, ((0, 0), (0, 0), (0, cin_pad), (0, 0)))
    kh, kw, cin, cout = w.shape
    wf = w.astype(jnp.bfloat16).reshape(kh, kw * cin, cout)
    return wf, b.astype(jnp.float32).reshape(1, cout)


def _permute_subpixel(w, b, r):
    """Reorder Cout from torch's [c, i, j] to [i, j, c] so each shuffle phase's
    channels are a contiguous slice of the conv output."""
    kh, kw, cin, cout = w.shape
    f = cout // (r * r)
    w = w.reshape(kh, kw, cin, f, r, r)
    w = jnp.transpose(w, (0, 1, 2, 4, 5, 3)).reshape(kh, kw, cin, cout)
    b = jnp.transpose(b.reshape(f, r, r), (1, 2, 0)).reshape(cout)
    return w, b


def prepare_params(params, scale):
    cin1 = params["conv1"][0].shape[2]
    cin1_pad = (-cin1) % 8   # pad conv1 Cin (=3) to 8 with zero channels

    w_sp, b_sp = _permute_subpixel(*params["subpixel_conv"], scale)
    w_out, b_out = params["output_conv"]          # (3, 3, F, 1), (1,)
    f_out = w_out.shape[2]

    prepared = {
        "cin1_pad": cin1_pad,
        "conv1": _fold_conv_params(*params["conv1"], cin_pad=cin1_pad),
        "conv2": _fold_conv_params(*params["conv2"]),
        "subpixel_conv": _fold_conv_params(w_sp, b_sp),
        "output_conv": (w_out.astype(jnp.bfloat16).reshape(9, f_out, 1),
                        b_out.astype(jnp.float32).reshape(1, 1)),
    }

    if params["res_blocks"]:
        w1s, b1s, w2s, b2s = [], [], [], []
        for (w1, b1, w2, b2) in params["res_blocks"]:
            wf1, bf1 = _fold_conv_params(w1, b1)
            wf2, bf2 = _fold_conv_params(w2, b2)
            w1s.append(wf1); b1s.append(bf1); w2s.append(wf2); b2s.append(bf2)
        prepared["trunk"] = (jnp.stack(w1s), jnp.stack(b1s),
                             jnp.stack(w2s), jnp.stack(b2s))
    else:
        prepared["trunk"] = None
    return prepared


def edsr_forward(params, x_nchw, scale):
    p = prepare_params(params, scale)
    x = jnp.transpose(x_nchw, (0, 2, 3, 1))                        # NHWC
    x = jnp.pad(x, ((0, 0), (0, 0), (0, 0), (0, p["cin1_pad"])))   # zero chans
    x = jnp.pad(x.astype(jnp.bfloat16), ((0, 0), (1, 1), (1, 1), (0, 0)))

    h = conv3x3(x, *p["conv1"])
    # NOTE: the PyTorch forward saves `residual = x` here but never uses it;
    # reproduced exactly (no global skip connection).
    if p["trunk"] is not None:
        h = residual_trunk(h, *p["trunk"])
    h = conv3x3(h, *p["conv2"])
    h = subpixel_shuffle_conv(h, *p["subpixel_conv"], scale)
    return output_conv(h, *p["output_conv"], scale)                # NCHW


# -------------------------- reference (plain JAX) --------------------------- #

def _ref_conv(x, w, b, relu=False):
    y = lax.conv_general_dilated(
        x, w, window_strides=(1, 1), padding="SAME",
        dimension_numbers=("NHWC", "HWIO", "NHWC"),
        preferred_element_type=jnp.float32)
    y = y + b
    if relu:
        y = jnp.maximum(y, 0.0)
    return y


def edsr_reference(params, x_nchw, scale, use_bf16):
    """Plain-JAX reference. use_bf16=True mirrors the kernel's bf16 storage /
    f32 accumulation exactly; use_bf16=False is the pure-f32 spec."""
    dt = jnp.bfloat16 if use_bf16 else jnp.float32
    cw = lambda w: w.astype(dt)
    x = jnp.transpose(x_nchw, (0, 2, 3, 1)).astype(dt)
    h = _ref_conv(x, cw(params["conv1"][0]), params["conv1"][1]).astype(dt)
    for (w1, b1, w2, b2) in params["res_blocks"]:
        t = _ref_conv(h, cw(w1), b1, relu=True).astype(dt)
        h = (_ref_conv(t, cw(w2), b2) + h.astype(jnp.float32)).astype(dt)
    h = _ref_conv(h, cw(params["conv2"][0]), params["conv2"][1]).astype(dt)
    h = _ref_conv(h, cw(params["subpixel_conv"][0]),
                  params["subpixel_conv"][1]).astype(dt)
    h = pixel_shuffle_nhwc(h, scale)
    y = _ref_conv(h, cw(params["output_conv"][0]), params["output_conv"][1])
    return jnp.transpose(y, (0, 3, 1, 2))


# ------------------------------ parameters ---------------------------------- #

def init_params(key, num_filters, num_res_blocks, scale):
    def conv_params(key, cin, cout, w_std=0.05):
        kw, kb = jax.random.split(key)
        w = jax.random.normal(kw, (3, 3, cin, cout), jnp.float32) * w_std
        b = jax.random.normal(kb, (cout,), jnp.float32) * 0.01
        return w, b

    keys = jax.random.split(key, 4 + 2 * num_res_blocks)
    params = {
        "conv1": conv_params(keys[0], 3, num_filters),
        "conv2": conv_params(keys[1], num_filters, num_filters),
        "subpixel_conv": conv_params(keys[2], num_filters,
                                     num_filters * scale * scale),
        "output_conv": conv_params(keys[3], num_filters, 1),
        "res_blocks": [],
    }
    for i in range(num_res_blocks):
        w1, b1 = conv_params(keys[4 + 2 * i], num_filters, num_filters)
        w2, b2 = conv_params(keys[5 + 2 * i], num_filters, num_filters)
        params["res_blocks"].append((w1, b1, w2, b2))
    return params


# --------------------------------- main -------------------------------------- #

if __name__ == "__main__":
    scale = 2
    num_filters = 32       # small synthetic config (module default: 256)
    num_res_blocks = 2     # small synthetic config (module default: 32)

    key = jax.random.PRNGKey(0)
    k_param, k_x = jax.random.split(key)
    params = init_params(k_param, num_filters, num_res_blocks, scale)

    # PyTorch-style NCHW input.
    x = jax.random.normal(k_x, (2, 3, 16, 16), jnp.float32)

    out = jax.block_until_ready(edsr_forward(params, x, scale))
    ref_bf16 = jax.block_until_ready(edsr_reference(params, x, scale, True))
    ref_f32 = jax.block_until_ready(edsr_reference(params, x, scale, False))

    assert out.shape == (2, 1, 16 * scale, 16 * scale), out.shape
    # Exact-math check vs a reference that mirrors the kernel's bf16 storage.
    assert jnp.allclose(out, ref_bf16, atol=2e-3, rtol=2e-3), (
        float(jnp.max(jnp.abs(out - ref_bf16))))
    # Semantic check vs the pure-f32 module (bf16 storage deviation only).
    assert jnp.allclose(out, ref_f32, atol=1e-1, rtol=1e-1), (
        float(jnp.max(jnp.abs(out - ref_f32))))

    print("KERNEL_OK")
</pallas_src>

<mosaic_0001>
module attributes {stable_mosaic.version = 11 : i64} {
  func.func @_conv3x3_kernel(%arg0: i32, %arg1: memref<1x18x18x8xbf16, #tpu.memory_space<vmem>>, %arg2: memref<3x24x32xbf16, #tpu.memory_space<vmem>>, %arg3: memref<1x32xf32, #tpu.memory_space<vmem>>, %arg4: memref<1x18x18x32xbf16, #tpu.memory_space<vmem>>, %arg5: memref<18x16x24xbf16, #tpu.memory_space<vmem>>) attributes {dimension_semantics = [#tpu.dimension_semantics<parallel>], iteration_bounds = array<i64: 2>, scalar_prefetch = 0 : i64, scratch_operands = 1 : i64, tpu.core_type = #tpu.core_type<tc>, window_params = [{transform_indices = @transform_0, window_bounds = array<i64: 1, 18, 18, 8>}, {pipeline_mode = #tpu.pipeline_mode<synchronous>, transform_indices = @transform_1, window_bounds = array<i64: 3, 24, 32>}, {pipeline_mode = #tpu.pipeline_mode<synchronous>, transform_indices = @transform_2, window_bounds = array<i64: 1, 32>}, {transform_indices = @transform_3, window_bounds = array<i64: 1, 18, 18, 32>}]} {
    %c0 = arith.constant 0 : index
    %c0_0 = arith.constant 0 : index
    %c0_1 = arith.constant 0 : index
    %c0_2 = arith.constant 0 : index
    %0 = vector.load %arg1[%c0, %c0_0, %c0_1, %c0_2] : memref<1x18x18x8xbf16, #tpu.memory_space<vmem>>, vector<1x18x16x8xbf16>
    %1 = vector.shape_cast %0 : vector<1x18x16x8xbf16> to vector<18x16x8xbf16>
    %c0_3 = arith.constant 0 : index
    %c0_4 = arith.constant 0 : index
    %c0_5 = arith.constant 0 : index
    %2 = vector.load %arg5[%c0_3, %c0_4, %c0_5] : memref<18x16x24xbf16, #tpu.memory_space<vmem>>, vector<18x16x8xbf16>
    tpu.vector_store %arg5[%c0_3, %c0_4, %c0_5], %1 {strides = array<i32>} : memref<18x16x24xbf16, #tpu.memory_space<vmem>>, vector<18x16x8xbf16>,
    %c0_6 = arith.constant 0 : index
    %c0_7 = arith.constant 0 : index
    %c1 = arith.constant 1 : index
    %c0_8 = arith.constant 0 : index
    %3 = vector.load %arg1[%c0_6, %c0_7, %c1, %c0_8] : memref<1x18x18x8xbf16, #tpu.memory_space<vmem>>, vector<1x18x16x8xbf16>
    %4 = vector.shape_cast %3 : vector<1x18x16x8xbf16> to vector<18x16x8xbf16>
    %c0_9 = arith.constant 0 : index
    %c0_10 = arith.constant 0 : index
    %c8 = arith.constant 8 : index
    %5 = vector.load %arg5[%c0_9, %c0_10, %c8] : memref<18x16x24xbf16, #tpu.memory_space<vmem>>, vector<18x16x8xbf16>
    tpu.vector_store %arg5[%c0_9, %c0_10, %c8], %4 {strides = array<i32>} : memref<18x16x24xbf16, #tpu.memory_space<vmem>>, vector<18x16x8xbf16>,
    %c0_11 = arith.constant 0 : index
    %c0_12 = arith.constant 0 : index
    %c2 = arith.constant 2 : index
    %c0_13 = arith.constant 0 : index
    %6 = vector.load %arg1[%c0_11, %c0_12, %c2, %c0_13] : memref<1x18x18x8xbf16, #tpu.memory_space<vmem>>, vector<1x18x16x8xbf16>
    %7 = vector.shape_cast %6 : vector<1x18x16x8xbf16> to vector<18x16x8xbf16>
    %c0_14 = arith.constant 0 : index
    %c0_15 = arith.constant 0 : index
    %c16 = arith.constant 16 : index
    %8 = vector.load %arg5[%c0_14, %c0_15, %c16] : memref<18x16x24xbf16, #tpu.memory_space<vmem>>, vector<18x16x8xbf16>
    tpu.vector_store %arg5[%c0_14, %c0_15, %c16], %7 {strides = array<i32>} : memref<18x16x24xbf16, #tpu.memory_space<vmem>>, vector<18x16x8xbf16>,
    %c0_16 = arith.constant 0 : index
    %c0_17 = arith.constant 0 : index
    %c0_18 = arith.constant 0 : index
    %9 = vector.load %arg5[%c0_16, %c0_17, %c0_18] : memref<18x16x24xbf16, #tpu.memory_space<vmem>>, vector<16x16x24xbf16>
    %10 = vector.shape_cast %9 : vector<16x16x24xbf16> to vector<256x24xbf16>
    %c0_19 = arith.constant 0 : index
    %c0_20 = arith.constant 0 : index
    %c0_21 = arith.constant 0 : index
    %11 = vector.load %arg2[%c0_19, %c0_20, %c0_21] : memref<3x24x32xbf16, #tpu.memory_space<vmem>>, vector<1x24x32xbf16>
    %12 = vector.shape_cast %11 : vector<1x24x32xbf16> to vector<24x32xbf16>
    %cst = arith.constant dense<0.000000e+00> : vector<256x32xf32>
    %13 = tpu.matmul %10, %12, %cst {dimension_numbers = #tpu.dot_dimension_numbers<[1], [0], [0], [1], [0, 0, 1, 1], [], []>} : vector<256x24xbf16>, vector<24x32xbf16>, vector<256x32xf32> -> vector<256x32xf32>
    %c1_22 = arith.constant 1 : index
    %c0_23 = arith.constant 0 : index
    %c0_24 = arith.constant 0 : index
    %14 = vector.load %arg5[%c1_22, %c0_23, %c0_24] : memref<18x16x24xbf16, #tpu.memory_space<vmem>>, vector<16x16x24xbf16>
    %15 = vector.shape_cast %14 : vector<16x16x24xbf16> to vector<256x24xbf16>
    %c1_25 = arith.constant 1 : index
    %c0_26 = arith.constant 0 : index
    %c0_27 = arith.constant 0 : index
    %16 = vector.load %arg2[%c1_25, %c0_26, %c0_27] : memref<3x24x32xbf16, #tpu.memory_space<vmem>>, vector<1x24x32xbf16>
    %17 = vector.shape_cast %16 : vector<1x24x32xbf16> to vector<24x32xbf16>
    %cst_28 = arith.constant dense<0.000000e+00> : vector<256x32xf32>
    %18 = tpu.matmul %15, %17, %cst_28 {dimension_numbers = #tpu.dot_dimension_numbers<[1], [0], [0], [1], [0, 0, 1, 1], [], []>} : vector<256x24xbf16>, vector<24x32xbf16>, vector<256x32xf32> -> vector<256x32xf32>
    %19 = arith.addf %13, %18 : vector<256x32xf32>
    %c2_29 = arith.constant 2 : index
    %c0_30 = arith.constant 0 : index
    %c0_31 = arith.constant 0 : index
    %20 = vector.load %arg5[%c2_29, %c0_30, %c0_31] : memref<18x16x24xbf16, #tpu.memory_space<vmem>>, vector<16x16x24xbf16>
    %21 = vector.shape_cast %20 : vector<16x16x24xbf16> to vector<256x24xbf16>
    %c2_32 = arith.constant 2 : index
    %c0_33 = arith.constant 0 : index
    %c0_34 = arith.constant 0 : index
    %22 = vector.load %arg2[%c2_32, %c0_33, %c0_34] : memref<3x24x32xbf16, #tpu.memory_space<vmem>>, vector<1x24x32xbf16>
    %23 = vector.shape_cast %22 : vector<1x24x32xbf16> to vector<24x32xbf16>
    %cst_35 = arith.constant dense<0.000000e+00> : vector<256x32xf32>
    %24 = tpu.matmul %21, %23, %cst_35 {dimension_numbers = #tpu.dot_dimension_numbers<[1], [0], [0], [1], [0, 0, 1, 1], [], []>} : vector<256x24xbf16>, vector<24x32xbf16>, vector<256x32xf32> -> vector<256x32xf32>
    %25 = arith.addf %19, %24 : vector<256x32xf32>
    %c0_36 = arith.constant 0 : index
    %c0_37 = arith.constant 0 : index
    %26 = vector.load %arg3[%c0_36, %c0_37] : memref<1x32xf32, #tpu.memory_space<vmem>>, vector<1x32xf32>
    %27 = vector.shape_cast %26 : vector<1x32xf32> to vector<32xf32>
    %28 = vector.shape_cast %27 : vector<32xf32> to vector<1x32xf32>
    %29 = vector.broadcast %28 : vector<1x32xf32> to vector<256x32xf32>
    %30 = arith.addf %25, %29 : vector<256x32xf32>
    %cst_38 = arith.constant 0.000000e+00 : bf16
    %31 = vector.broadcast %cst_38 : bf16 to vector<1x18x32xbf16>
    %c0_39 = arith.constant 0 : index
    %c0_40 = arith.constant 0 : index
    %c0_41 = arith.constant 0 : index
    %c0_42 = arith.constant 0 : index
    %32 = vector.load %arg4[%c0_39, %c0_40, %c0_41, %c0_42] : memref<1x18x18x32xbf16, #tpu.memory_space<vmem>>, vector<1x1x18x32xbf16>
    %33 = vector.shape_cast %32 : vector<1x1x18x32xbf16> to vector<1x18x32xbf16>
    %34 = vector.shape_cast %31 : vector<1x18x32xbf16> to vector<1x1x18x32xbf16>
    tpu.vector_store %arg4[%c0_39, %c0_40, %c0_41, %c0_42], %34 {strides = array<i32>} : memref<1x18x18x32xbf16, #tpu.memory_space<vmem>>, vector<1x1x18x32xbf16>,
    %cst_43 = arith.constant 0.000000e+00 : bf16
    %35 = vector.broadcast %cst_43 : bf16 to vector<1x18x32xbf16>
    %c0_44 = arith.constant 0 : index
    %c17 = arith.constant 17 : index
    %c0_45 = arith.constant 0 : index
    %c0_46 = arith.constant 0 : index
    %36 = vector.load %arg4[%c0_44, %c17, %c0_45, %c0_46] : memref<1x18x18x32xbf16, #tpu.memory_space<vmem>>, vector<1x1x18x32xbf16>
    %37 = vector.shape_cast %36 : vector<1x1x18x32xbf16> to vector<1x18x32xbf16>
    %38 = vector.shape_cast %35 : vector<1x18x32xbf16> to vector<1x1x18x32xbf16>
    tpu.vector_store %arg4[%c0_44, %c17, %c0_45, %c0_46], %38 {strides = array<i32>} : memref<1x18x18x32xbf16, #tpu.memory_space<vmem>>, vector<1x1x18x32xbf16>,
    %cst_47 = arith.constant 0.000000e+00 : bf16
    %39 = vector.broadcast %cst_47 : bf16 to vector<18x1x32xbf16>
    %c0_48 = arith.constant 0 : index
    %c0_49 = arith.constant 0 : index
    %c0_50 = arith.constant 0 : index
    %c0_51 = arith.constant 0 : index
    %40 = vector.load %arg4[%c0_48, %c0_49, %c0_50, %c0_51] : memref<1x18x18x32xbf16, #tpu.memory_space<vmem>>, vector<1x18x1x32xbf16>
    %41 = vector.shape_cast %40 : vector<1x18x1x32xbf16> to vector<18x1x32xbf16>
    %42 = vector.shape_cast %39 : vector<18x1x32xbf16> to vector<1x18x1x32xbf16>
    tpu.vector_store %arg4[%c0_48, %c0_49, %c0_50, %c0_51], %42 {strides = array<i32>} : memref<1x18x18x32xbf16, #tpu.memory_space<vmem>>, vector<1x18x1x32xbf16>,
    %cst_52 = arith.constant 0.000000e+00 : bf16
    %43 = vector.broadcast %cst_52 : bf16 to vector<18x1x32xbf16>
    %c0_53 = arith.constant 0 : index
    %c0_54 = arith.constant 0 : index
    %c17_55 = arith.constant 17 : index
    %c0_56 = arith.constant 0 : index
    %44 = vector.load %arg4[%c0_53, %c0_54, %c17_55, %c0_56] : memref<1x18x18x32xbf16, #tpu.memory_space<vmem>>, vector<1x18x1x32xbf16>
    %45 = vector.shape_cast %44 : vector<1x18x1x32xbf16> to vector<18x1x32xbf16>
    %46 = vector.shape_cast %43 : vector<18x1x32xbf16> to vector<1x18x1x32xbf16>
    tpu.vector_store %arg4[%c0_53, %c0_54, %c17_55, %c0_56], %46 {strides = array<i32>} : memref<1x18x18x32xbf16, #tpu.memory_space<vmem>>, vector<1x18x1x32xbf16>,
    %47 = vector.shape_cast %30 : vector<256x32xf32> to vector<16x16x32xf32>
    %48 = arith.truncf %47 : vector<16x16x32xf32> to vector<16x16x32xbf16>
    %c0_57 = arith.constant 0 : index
    %c1_58 = arith.constant 1 : index
    %c1_59 = arith.constant 1 : index
    %c0_60 = arith.constant 0 : index
    %49 = vector.load %arg4[%c0_57, %c1_58, %c1_59, %c0_60] : memref<1x18x18x32xbf16, #tpu.memory_space<vmem>>, vector<1x16x16x32xbf16>
    %50 = vector.shape_cast %49 : vector<1x16x16x32xbf16> to vector<16x16x32xbf16>
    %51 = vector.shape_cast %48 : vector<16x16x32xbf16> to vector<1x16x16x32xbf16>
    tpu.vector_store %arg4[%c0_57, %c1_58, %c1_59, %c0_60], %51 {strides = array<i32>} : memref<1x18x18x32xbf16, #tpu.memory_space<vmem>>, vector<1x16x16x32xbf16>,
    return
  }
  func.func @transform_0(%arg0: i32) -> (i32, i32, i32, i32) {
    %c0_i32 = arith.constant 0 : i32
    %c0_i32_0 = arith.constant 0 : i32
    %c0_i32_1 = arith.constant 0 : i32
    %c0_i32_2 = arith.constant 0 : i32
    return %arg0, %c0_i32, %c0_i32_0, %c0_i32_1 : i32, i32, i32, i32
  }
  func.func @transform_1(%arg0: i32) -> (i32, i32, i32) {
    %c0_i32 = arith.constant 0 : i32
    %c0_i32_0 = arith.constant 0 : i32
    %c0_i32_1 = arith.constant 0 : i32
    %c0_i32_2 = arith.constant 0 : i32
    return %c0_i32, %c0_i32_0, %c0_i32_1 : i32, i32, i32
  }
  func.func @transform_2(%arg0: i32) -> (i32, i32) {
    %c0_i32 = arith.constant 0 : i32
    %c0_i32_0 = arith.constant 0 : i32
    %c0_i32_1 = arith.constant 0 : i32
    return %c0_i32, %c0_i32_0 : i32, i32
  }
  func.func @transform_3(%arg0: i32) -> (i32, i32, i32, i32) {
    %c0_i32 = arith.constant 0 : i32
    %c0_i32_0 = arith.constant 0 : i32
    %c0_i32_1 = arith.constant 0 : i32
    %c0_i32_2 = arith.constant 0 : i32
    return %arg0, %c0_i32, %c0_i32_0, %c0_i32_1 : i32, i32, i32, i32
  }
}

</mosaic_0001>

<bundles_post_ra>
// kernel: tpu_custom_call.1
= control target key start
LH: loop header
LB: loop body
LE: loop exit
PB: predicated region body
PF: predicated region fallthrough
CT: control target
= control target key end

     0   :  { %s3336_s12 = smov 0   ;;  %s4139_s0 = inlined_call_operand.vmem [shape: bf16[2,18,18,8], index: 0, kind: input, shape index: {}]   ;;  %s4140_s1 = inlined_call_operand.vmem [shape: bf16[3,24,32], index: 1, kind: input, shape index: {}]   ;;  %s4141_s2 = inlined_call_operand.vmem [shape: f32[1,32], index: 2, kind: input, shape index: {}]   ;;  %s4142_s3 = inlined_call_operand.vmem [shape: bf16[2,18,18,32], index: 3, kind: output, shape index: {}]  }
   0x1 LB: > { %s2656_s13 = sadd.s32 4294967295, %s3311_s12   ;;  %p2660_p0 = scmp.ge.s32.totalorder %s3311_s12, 1  ;;  %s3311_s12 = sphi %s3336_s12, %s13_s12  }
   0x2   : > { %p137_p1 = scmp.lt.s32.totalorder %s3311_s12, 3 }
   0x4   : > { %p138_p2 = pnand %p2660_p0, %p137_p1 }
   0x5   : > { %p161_p3 = scmp.lt.s32.totalorder (!%p138_p2), %s2656_s13, 1  ;;  %vm533_vm0 = vsmask.f32 (!%p138_p2), 7424  ;;  %vm1021_vm1 = vcmask (!%p138_p2), 1046528   ;;  %s3313_s18 = smov (!%p138_p2), 16   ;;  %vm316_vm2 = vcmask (!%p138_p2), 64512  }
   0x6   : > { %141 = sbr.rel (%p138_p2) target bundleno = 485 (0x1e5), region = 32  ;;  %s3314_s19 = smov (!%p138_p2), 8   ;;  %vm1247_vm3 = vcmask (!%p138_p2), 1043456   ;;  %vm804_vm4 = vcmask (!%p138_p2), 130112   ;;  %vm1130_vm5 = vcmask (!%p138_p2), 195712   ;;  %vm1198_vm6 = vcmask (!%p138_p2), 195584  }
   0x7   : > { %vm1946_vm7 = vcmask (!%p138_p2), 257024   ;;  %vm1949_vm8 = vcmask (!%p138_p2), 253952   ;;  %vm1956_vm9 = vsmask.f32 (!%p138_p2), 256  ;;  %vm2012_vm11 = vsmask.f32 (!%p138_p2), 7938 }
   0x8   : > { %vm3680_vm10 = vmand (!%p138_p2), %vm1949_vm8, %vm1956_vm9  ;;  %vm2164_vm13 = vsmask.f32 (!%p138_p2), 4368 }
   0x9   : > { %vm3689_vm12 = vmand (!%p138_p2), %vm1949_vm8, %vm2012_vm11 }
   0xa   : > { %vm3864_vm14 = vmand (!%p138_p2), %vm1946_vm7, %vm2012_vm11 }
   0xb   : > { %vm3873_vm15 = vmor (!%p138_p2), %vm1956_vm9, %vm2164_vm13 }
   0xd   : > { %s4152_s13 = smov (!%p161_p3, %s2656_s13), 1 }
   0xe   : > { %s3197_s14 = smul.u32 216, %s4152_s13 }
  0x10   : > { %s3352_s17 = scalar_lea.vmem %s4139_s0, %s3197_s14  ;;  %s3667_s7 = scalar_lea.vmem %s4142_s3, %s3197_s14 }
  0x11   : > { %v3209_v0 = vld [vmem:[%s3352_s17] sm:$0xff]   ;;  %v3210_v1 = vld [vmem:[%s3352_s17 + $0x8] ss:$0 sps:$4 sm:$0x11]   ;;  %v3213_v8 = vld [vmem:[%s3352_s17 + $0xc] sm:$0xff]  }
  0x12   : > { %v3211_v2 = vld [vmem:[%s3352_s17] sm:$0xfe]   ;;  %v535_v3 = vshrl.u32 %v3209_v0, 16  ;;  %v537_v4 = vshll.u32 %v3209_v0, 16  ;;  %v542_v5 = vshll.u32 %v3210_v1, 16  ;;  %v3215_v12 = vld [vmem:[%s3352_s17 + $0x18] sm:$0xff]  }
  0x13   : > { %v3212_v6 = vld [vmem:[%s3352_s17 + $0x8] ss:$0 sps:$4 sm:$0x11]   ;;  %v1022_v7 = vrot.slane %v3211_v2, 1  ;;  %v547_v14 = vshrl.u32 %v3213_v8, 16  ;;  %v549_v15 = vshll.u32 %v3213_v8, 16 }
  0x14   : > { %v539_v9 = vrot.slane %v537_v4, 1  ;;  %v544_v10 = vrot.slane %v542_v5, 1  ;;  %v1023_v11 = vrot.slane %v3212_v6, 1  ;;  %v3214_v13 = vld [vmem:[%s3352_s17 + $0x14] ss:$0 sps:$4 sm:$0x11]  }
  0x15   : > { %v3221_v16 = vld [vmem:[%s3352_s17 + $0x24] sm:$0xff]   ;;  %v551_v19 = vrot.slane %v549_v15, 1  ;;  %v554_v20 = vshll.u32 %v3214_v13, 16  ;;  %v3216_v21 = vld [vmem:[%s3352_s17 + $0x20] ss:$0 sps:$4 sm:$0x11]  }
  0x16   : > { %v540_v17 = vor.u32 %v539_v9, %v535_v3  ;;  %v1024_v18 = vsel %vm1021_vm1, %v1022_v7, %v1023_v11  ;;  %v559_v22 = vshrl.u32 %v3215_v12, 16  ;;  %v561_v24 = vshll.u32 %v3215_v12, 16  ;;  %v3217_v29 = vld [vmem:[%s3352_s17 + $0xc] sm:$0xfe]   ;;  %v3219_v37 = vld [vmem:[%s3352_s17 + $0x18] sm:$0xfe]  }
  0x17   : > { %1076 = vrot.lane.b32.xlu1 %v1024_v18, %s3313_s18  ;;  %v571_v25 = vshrl.u32 %v3221_v16, 16  ;;  %v552_v26 = vor.u32 %v551_v19, %v547_v14  ;;  %v556_v27 = vrot.slane %v554_v20, 1  ;;  %v566_v28 = vshll.u32 %v3216_v21, 16  ;;  %v3218_v31 = vld [vmem:[%s3352_s17 + $0x14] ss:$0 sps:$4 sm:$0x11]  }
  0x18   : > { %v545_v23 = vsel %vm533_vm0, %v540_v17, %v544_v10  ;;  %v563_v30 = vrot.slane %v561_v24, 1  ;;  %v1025_v34 = vrot.slane %v3217_v29, 1  ;;  %v1026_v36 = vrot.slane %v3218_v31, 1  ;;  %v3220_v38 = vld [vmem:[%s3352_s17 + $0x20] ss:$0 sps:$4 sm:$0x11]  }
  0x19   : > { %750 = vrot.lane.b32.xlu0 %v545_v23, %s3314_s19  ;;  %v557_v32 = vsel %vm533_vm0, %v552_v26, %v556_v27  ;;  %v568_v33 = vrot.slane %v566_v28, 1  ;;  %v1028_v41 = vrot.slane %v3219_v37, 1  ;;  %v1029_v42 = vrot.slane %v3220_v38, 1  ;;  %v3222_v43 = vld [vmem:[%s3352_s17 + $0x2c] ss:$0 sps:$4 sm:$0x11]  }
  0x1a   : > { %v564_v35 = vor.u32 %v563_v30, %v559_v22  ;;  %v1027_v40 = vsel %vm1021_vm1, %v1025_v34, %v1026_v36  ;;  %v3223_v44 = vld [vmem:[%s3352_s17 + $0x30] sm:$0xff]   ;;  %v573_v45 = vshll.u32 %v3221_v16, 16  ;;  %v3229_v46 = vld [vmem:[%s3352_s17 + $0x3c] sm:$0xff]   ;;  %v578_v48 = vshll.u32 %v3222_v43, 16  ;;  %v3225_v58 = vld [vmem:[%s3352_s17 + $0x24] sm:$0xfe]  }
  0x1b   : > { %v1030_v47 = vsel %vm1021_vm1, %v1028_v41, %v1029_v42  ;;  %v3224_v49 = vld [vmem:[%s3352_s17 + $0x38] ss:$0 sps:$4 sm:$0x11]   ;;  %v583_v51 = vshrl.u32 %v3223_v44, 16  ;;  %v585_v52 = vshll.u32 %v3223_v44, 16  ;;  %v595_v53 = vshrl.u32 %v3229_v46, 16 }
  0x1c   : > { %v569_v39 = vsel %vm533_vm0, %v564_v35, %v568_v33  ;;  %v575_v50 = vrot.slane %v573_v45, 1  ;;  %v580_v54 = vrot.slane %v578_v48, 1  ;;  %v590_v55 = vshll.u32 %v3224_v49, 16  ;;  %v3226_v59 = vld [vmem:[%s3352_s17 + $0x2c] ss:$0 sps:$4 sm:$0x11]  }
  0x1d   : > { %752 = vrot.lane.b32.xlu0 %v557_v32, %s3314_s19  ;;  %754 = vrot.lane.b32.xlu1 %v569_v39, %s3314_s19  ;;  %v587_v57 = vrot.slane %v585_v52, 1  ;;  %v597_v61 = vshll.u32 %v3229_v46, 16  ;;  %v1031_v0 = vrot.slane %v3225_v58, 1  ;;  %v1032_v1 = vrot.slane %v3226_v59, 1  ;;  %v3227_v2 = vld [vmem:[%s3352_s17 + $0x30] sm:$0xfe]  }
  0x1e   : > { %v576_v56 = vor.u32 %v575_v50, %v571_v25  ;;  %v592_v60 = vrot.slane %v590_v55, 1  ;;  %v3228_v3 = vld [vmem:[%s3352_s17 + $0x38] ss:$0 sps:$4 sm:$0x11]   ;;  %v1034_v7 = vrot.slane %v3227_v2, 1  ;;  %v3231_v8 = vld [vmem:[%s3352_s17 + $0x48] sm:$0xff]  }
  0x1f   : > { %v588_v63 = vor.u32 %v587_v57, %v583_v51  ;;  %v599_v4 = vrot.slane %v597_v61, 1  ;;  %v1033_v6 = vsel %vm1021_vm1, %v1031_v0, %v1032_v1  ;;  %v1035_v9 = vrot.slane %v3228_v3, 1  ;;  %v3230_v10 = vld [vmem:[%s3352_s17 + $0x44] ss:$0 sps:$4 sm:$0x11]   ;;  %v3237_v18 = vld [vmem:[%s3352_s17 + $0x54] sm:$0xff]  }
  0x20   : > { %v581_v62 = vsel %vm533_vm0, %v576_v56, %v580_v54  ;;  %v607_v11 = vshrl.u32 %v3231_v8, 16  ;;  %v609_v12 = vshll.u32 %v3231_v8, 16  ;;  %v602_v15 = vshll.u32 %v3230_v10, 16  ;;  %v3232_v16 = vld [vmem:[%s3352_s17 + $0x50] ss:$0 sps:$4 sm:$0x11]  }
  0x21   : > { %1078 = vrot.lane.b32.xlu0 %v1027_v40, %s3313_s18  ;;  %1080 = vrot.lane.b32.xlu1 %v1030_v47, %s3313_s18  ;;  %v593_v5 = vsel %vm533_vm0, %v588_v63, %v592_v60  ;;  %v1036_v13 = vsel %vm1021_vm1, %v1034_v7, %v1035_v9  ;;  %v600_v14 = vor.u32 %v599_v4, %v595_v53  ;;  %v614_v20 = vshll.u32 %v3232_v16, 16  ;;  %v3233_v21 = vld [vmem:[%s3352_s17 + $0x3c] sm:$0xfe]   ;;  %v3234_v23 = vld [vmem:[%s3352_s17 + $0x44] ss:$0 sps:$4 sm:$0x11]  }
  0x22   : > { %v611_v17 = vrot.slane %v609_v12, 1  ;;  %v604_v19 = vrot.slane %v602_v15, 1  ;;  %v619_v24 = vshrl.u32 %v3237_v18, 16  ;;  %v1037_v27 = vrot.slane %v3233_v21, 1  ;;  %v3235_v28 = vld [vmem:[%s3352_s17 + $0x48] sm:$0xfe]  }
  0x23   : > { %v616_v26 = vrot.slane %v614_v20, 1  ;;  %v1038_v29 = vrot.slane %v3234_v23, 1  ;;  %v3236_v30 = vld [vmem:[%s3352_s17 + $0x50] ss:$0 sps:$4 sm:$0x11]   ;;  %v1040_v32 = vrot.slane %v3235_v28, 1 }
  0x24   : > { %v612_v22 = vor.u32 %v611_v17, %v607_v11  ;;  %v605_v25 = vsel %vm533_vm0, %v600_v14, %v604_v19  ;;  %v621_v33 = vshll.u32 %v3237_v18, 16  ;;  %v1041_v35 = vrot.slane %v3236_v30, 1  ;;  %v3238_v36 = vld [vmem:[%s3352_s17 + $0x5c] ss:$0 sps:$4 sm:$0x11]   ;;  %v3239_v38 = vld [vmem:[%s3352_s17 + $0x60] sm:$0xff]  }
  0x25   : > { %756 = vrot.lane.b32.xlu0 %v581_v62, %s3314_s19  ;;  %758 = vrot.lane.b32.xlu1 %v593_v5, %s3314_s19  ;;  %v1039_v34 = vsel %vm1021_vm1, %v1037_v27, %v1038_v29  ;;  %v626_v40 = vshll.u32 %v3238_v36, 16  ;;  %v3240_v41 = vld [vmem:[%s3352_s17 + $0x68] ss:$0 sps:$4 sm:$0x11]   ;;  %v631_v43 = vshrl.u32 %v3239_v38, 16  ;;  %v633_v44 = vshll.u32 %v3239_v38, 16 }
  0x26   : > { %v617_v31 = vsel %vm533_vm0, %v612_v22, %v616_v26  ;;  %v623_v37 = vrot.slane %v621_v33, 1  ;;  %v1042_v39 = vsel %vm1021_vm1, %v1040_v32, %v1041_v35  ;;  %v638_v46 = vshll.u32 %v3240_v41, 16  ;;  %v3241_v47 = vld [vmem:[%s3352_s17 + $0x54] sm:$0xfe]   ;;  %v3243_v53 = vld [vmem:[%s3352_s17 + $0x60] sm:$0xfe]  }
  0x27   : > { %v628_v45 = vrot.slane %v626_v40, 1  ;;  %v635_v48 = vrot.slane %v633_v44, 1  ;;  %v3242_v49 = vld [vmem:[%s3352_s17 + $0x5c] ss:$0 sps:$4 sm:$0x11]   ;;  %v1043_v52 = vrot.slane %v3241_v47, 1 }
  0x28   : > { %v624_v42 = vor.u32 %v623_v37, %v619_v24  ;;  %v640_v51 = vrot.slane %v638_v46, 1  ;;  %v1044_v55 = vrot.slane %v3242_v49, 1  ;;  %v3244_v56 = vld [vmem:[%s3352_s17 + $0x68] ss:$0 sps:$4 sm:$0x11]   ;;  %v1046_v57 = vrot.slane %v3243_v53, 1 }
  0x29   : > { %1082 = vrot.lane.b32.xlu0 %v1033_v6, %s3313_s18  ;;  %1084 = vrot.lane.b32.xlu1 %v1036_v13, %s3313_s18  ;;  %v636_v54 = vor.u32 %v635_v48, %v631_v43  ;;  %v3245_v58 = vld [vmem:[%s3352_s17 + $0x6c] sm:$0xff]   ;;  %v1047_v61 = vrot.slane %v3244_v56, 1  ;;  %v3246_v62 = vld [vmem:[%s3352_s17 + $0x74] ss:$0 sps:$4 sm:$0x11]  }
  0x2a   : > { %v629_v50 = vsel %vm533_vm0, %v624_v42, %v628_v45  ;;  %v1045_v60 = vsel %vm1021_vm1, %v1043_v52, %v1044_v55  ;;  %v643_v63 = vshrl.u32 %v3245_v58, 16  ;;  %v645_v0 = vshll.u32 %v3245_v58, 16  ;;  %v3247_v3 = vld [vmem:[%s3352_s17 + $0x78] sm:$0xff]   ;;  %v3248_v4 = vld [vmem:[%s3352_s17 + $0x80] ss:$0 sps:$4 sm:$0x11]  }
  0x2b   : > { %v641_v59 = vsel %vm533_vm0, %v636_v54, %v640_v51  ;;  %v1048_v1 = vsel %vm1021_vm1, %v1046_v57, %v1047_v61  ;;  %v650_v2 = vshll.u32 %v3246_v62, 16  ;;  %v3253_v6 = vld [vmem:[%s3352_s17 + $0x84] sm:$0xff]   ;;  %v655_v8 = vshrl.u32 %v3247_v3, 16  ;;  %v3255_v11 = vld [vmem:[%s3352_s17 + $0x90] sm:$0xff]   ;;  %v3251_v21 = vld [vmem:[%s3352_s17 + $0x78] sm:$0xfe]  }
  0x2c   : > { %v647_v5 = vrot.slane %v645_v0, 1  ;;  %v657_v9 = vshll.u32 %v3247_v3, 16  ;;  %v662_v10 = vshll.u32 %v3248_v4, 16  ;;  %v3249_v13 = vld [vmem:[%s3352_s17 + $0x6c] sm:$0xfe]   ;;  %v667_v15 = vshrl.u32 %v3253_v6, 16 }
  0x2d   : > { %760 = vrot.lane.b32.xlu0 %v605_v25, %s3314_s19  ;;  %762 = vrot.lane.b32.xlu1 %v617_v31, %s3314_s19  ;;  %v652_v7 = vrot.slane %v650_v2, 1  ;;  %v3250_v14 = vld [vmem:[%s3352_s17 + $0x74] ss:$0 sps:$4 sm:$0x11]   ;;  %v1049_v19 = vrot.slane %v3249_v13, 1  ;;  %v669_v24 = vshll.u32 %v3253_v6, 16 }
  0x2e   : > { %v648_v12 = vor.u32 %v647_v5, %v643_v63  ;;  %v659_v16 = vrot.slane %v657_v9, 1  ;;  %v664_v17 = vrot.slane %v662_v10, 1  ;;  %v1050_v20 = vrot.slane %v3250_v14, 1  ;;  %v3252_v23 = vld [vmem:[%s3352_s17 + $0x80] ss:$0 sps:$4 sm:$0x11]  }
  0x2f   : > { %v1052_v26 = vrot.slane %v3251_v21, 1  ;;  %v679_v27 = vshrl.u32 %v3255_v11, 16  ;;  %v1053_v29 = vrot.slane %v3252_v23, 1  ;;  %v3254_v30 = vld [vmem:[%s3352_s17 + $0x8c] ss:$0 sps:$4 sm:$0x11]  }
  0x30   : > { %v653_v18 = vsel %vm533_vm0, %v648_v12, %v652_v7  ;;  %v660_v22 = vor.u32 %v659_v16, %v655_v8  ;;  %v1051_v25 = vsel %vm1021_vm1, %v1049_v19, %v1050_v20  ;;  %v671_v31 = vrot.slane %v669_v24, 1  ;;  %v3256_v36 = vld [vmem:[%s3352_s17 + $0x98] ss:$0 sps:$4 sm:$0x11]   ;;  %v3261_v38 = vld [vmem:[%s3352_s17 + $0x9c] sm:$0xff]   ;;  %v3263_v58 = vld [vmem:[%s3352_s17 + $0xa8] sm:$0xff]  }
  0x31   : > { %1086 = vrot.lane.b32.xlu0 %v1039_v34, %s3313_s18  ;;  %1088 = vrot.lane.b32.xlu1 %v1042_v39, %s3313_s18  ;;  %v681_v32 = vshll.u32 %v3255_v11, 16  ;;  %v1054_v33 = vsel %vm1021_vm1, %v1052_v26, %v1053_v29  ;;  %v674_v35 = vshll.u32 %v3254_v30, 16  ;;  %v686_v41 = vshll.u32 %v3256_v36, 16  ;;  %v3257_v42 = vld [vmem:[%s3352_s17 + $0x84] sm:$0xfe]   ;;  %v3269_v14 = vld [vmem:[%s3352_s17 + $0xb4] sm:$0xff]  }
  0x32   : > { %v665_v28 = vsel %vm533_vm0, %v660_v22, %v664_v17  ;;  %v672_v34 = vor.u32 %v671_v31, %v667_v15  ;;  %v3258_v43 = vld [vmem:[%s3352_s17 + $0x8c] ss:$0 sps:$4 sm:$0x11]   ;;  %v691_v44 = vshrl.u32 %v3261_v38, 16  ;;  %v1055_v47 = vrot.slane %v3257_v42, 1  ;;  %v3271_v23 = vld [vmem:[%s3352_s17 + $0xc0] sm:$0xff]  }
  0x33   : > { %v683_v37 = vrot.slane %v681_v32, 1  ;;  %v676_v39 = vrot.slane %v674_v35, 1  ;;  %v688_v46 = vrot.slane %v686_v41, 1  ;;  %v3259_v48 = vld [vmem:[%s3352_s17 + $0x90] sm:$0xfe]   ;;  %v1056_v49 = vrot.slane %v3258_v43, 1 }
  0x34   : > { %v1058_v52 = vrot.slane %v3259_v48, 1  ;;  %v693_v53 = vshll.u32 %v3261_v38, 16  ;;  %v3262_v56 = vld [vmem:[%s3352_s17 + $0xa4] ss:$0 sps:$4 sm:$0x11]   ;;  %v703_v63 = vshrl.u32 %v3263_v58, 16 }
  0x35   : > { %764 = vrot.lane.b32.xlu0 %v629_v50, %s3314_s19  ;;  %766 = vrot.lane.b32.xlu1 %v641_v59, %s3314_s19  ;;  %v684_v40 = vor.u32 %v683_v37, %v679_v27  ;;  %v677_v45 = vsel %vm533_vm0, %v672_v34, %v676_v39  ;;  %v3260_v50 = vld [vmem:[%s3352_s17 + $0x98] ss:$0 sps:$4 sm:$0x11]   ;;  %v1057_v54 = vsel %vm1021_vm1, %v1055_v47, %v1056_v49  ;;  %v3264_v61 = vld [vmem:[%s3352_s17 + $0xb0] ss:$0 sps:$4 sm:$0x11]  }
  0x36   : > { %v1059_v55 = vrot.slane %v3260_v50, 1  ;;  %v695_v57 = vrot.slane %v693_v53, 1  ;;  %v705_v0 = vshll.u32 %v3263_v58, 16  ;;  %v710_v2 = vshll.u32 %v3264_v61, 16  ;;  %v3265_v3 = vld [vmem:[%s3352_s17 + $0x9c] sm:$0xfe]  }
  0x37   : > { %v689_v51 = vsel %vm533_vm0, %v684_v40, %v688_v46  ;;  %v3266_v5 = vld [vmem:[%s3352_s17 + $0xa4] ss:$0 sps:$4 sm:$0x11]   ;;  %v1061_v8 = vrot.slane %v3265_v3, 1  ;;  %v3267_v9 = vld [vmem:[%s3352_s17 + $0xa8] sm:$0xfe]  }
  0x38   : > { %v1060_v59 = vsel %vm1021_vm1, %v1058_v52, %v1059_v55  ;;  %v696_v62 = vor.u32 %v695_v57, %v691_v44  ;;  %v707_v4 = vrot.slane %v705_v0, 1  ;;  %v712_v7 = vrot.slane %v710_v2, 1  ;;  %v3268_v12 = vld [vmem:[%s3352_s17 + $0xb0] ss:$0 sps:$4 sm:$0x11]   ;;  %v3281_v27 = vld [vmem:[%s3352_s17] sm:$0xff]  }
  0x39   : > { %1090 = vrot.lane.b32.xlu0 %v1045_v60, %s3313_s18  ;;  %1092 = vrot.lane.b32.xlu1 %v1048_v1, %s3313_s18  ;;  %v698_v60 = vshll.u32 %v3262_v56, 16  ;;  %v1062_v11 = vrot.slane %v3266_v5, 1  ;;  %v1064_v13 = vrot.slane %v3267_v9, 1  ;;  %v1065_v17 = vrot.slane %v3268_v12, 1  ;;  %317 = vst.msk [vmem:[#allocation2] sm:$0xff] %vm316_vm2, %v3281_v27  ;;  %v3282_v47 = vld [vmem:[%s3352_s17 + $0xc] sm:$0xff]  }
  0x3a   : > { %v708_v10 = vor.u32 %v707_v4, %v703_v63  ;;  %v715_v19 = vshrl.u32 %v3269_v14, 16  ;;  %v717_v20 = vshll.u32 %v3269_v14, 16  ;;  %v3272_v24 = vld [vmem:[%s3352_s17 + $0xc8] ss:$0 sps:$4 sm:$0x11]   ;;  %v727_v29 = vshrl.u32 %v3271_v23, 16 }
  0x3b   : > { %v700_v1 = vrot.slane %v698_v60, 1  ;;  %v1063_v16 = vsel %vm1021_vm1, %v1061_v8, %v1062_v11  ;;  %v1066_v21 = vsel %vm1021_vm1, %v1064_v13, %v1065_v17  ;;  %v729_v30 = vshll.u32 %v3271_v23, 16  ;;  %v3274_v34 = vld [vmem:[%s3352_s17 + $0xbc] ss:$0 sps:$4 sm:$0x11]   ;;  %318 = vst.msk [vmem:[#allocation2 + $0x8] sm:$0xff] %vm316_vm2, %v3282_v47 }
  0x3c   : > { %v713_v15 = vsel %vm533_vm0, %v708_v10, %v712_v7  ;;  %v719_v26 = vrot.slane %v717_v20, 1  ;;  %v734_v31 = vshll.u32 %v3272_v24, 16  ;;  %v1068_v40 = vrot.slane %v3274_v34, 1  ;;  %v3275_v41 = vld [vmem:[%s3352_s17 + $0xc0] sm:$0xfe]   ;;  %v3283_v52 = vld [vmem:[%s3352_s17 + $0x18] sm:$0xff]  }
  0x3d   : > { %768 = vrot.lane.b32.xlu0 %v653_v18, %s3314_s19  ;;  %770 = vrot.lane.b32.xlu1 %v665_v28, %s3314_s19  ;;  %v701_v6 = vsel %vm533_vm0, %v696_v62, %v700_v1  ;;  %v3270_v18 = vld [vmem:[%s3352_s17 + $0xbc] ss:$0 sps:$4 sm:$0x11]   ;;  %v731_v36 = vrot.slane %v729_v30, 1  ;;  %v1070_v46 = vrot.slane %v3275_v41, 1  ;;  %319 = vst.msk [vmem:[#allocation2 + $0x10] sm:$0xff] %vm316_vm2, %v3283_v52 }
  0x3e   : > { %v722_v22 = vshll.u32 %v3270_v18, 16  ;;  %v720_v32 = vor.u32 %v719_v26, %v715_v19  ;;  %v736_v37 = vrot.slane %v734_v31, 1  ;;  %v3276_v43 = vld [vmem:[%s3352_s17 + $0xc8] ss:$0 sps:$4 sm:$0x11]   ;;  %v3284_v61 = vld [vmem:[%s4140_s1 + $0xc] sm:$0xff]  }
  0x3f   : > { %v732_v42 = vor.u32 %v731_v36, %v727_v29  ;;  %v1071_v49 = vrot.slane %v3276_v43, 1  ;;  %v3278_v50 = vld [vmem:[%s3352_s17 + $0xd4] ss:$0 sps:$4 sm:$0x11]   ;;  %v3279_v56 = vld [vmem:[%s3352_s17 + $0xcc] sm:$0xfe]   ;;  %3017 = vmatprep.subr.bf16.mxu1 %v3284_v61 }
  0x40   : > { %v724_v28 = vrot.slane %v722_v22, 1  ;;  %v746_v55 = vshll.u32 %v3278_v50, 16  ;;  %v3280_v57 = vld [vmem:[%s3352_s17 + $0xd4] ss:$0 sps:$4 sm:$0x11]   ;;  %v3506_v62 = vld [vmem:[%s4140_s1] sm:$0xff]   ;;  %3018 = vmatpush3.bf16.msra.mxu1 %v3284_v61 }
  0x41   : > { %1094 = vrot.lane.b32.xlu0 %v1051_v25, %s3313_s18  ;;  %1096 = vrot.lane.b32.xlu1 %v1054_v33, %s3313_s18  ;;  %v3277_v25 = vld [vmem:[%s3352_s17 + $0xcc] sm:$0xff]   ;;  %v3273_v33 = vld [vmem:[%s3352_s17 + $0xb4] sm:$0xfe]   ;;  %v737_v48 = vsel %vm533_vm0, %v732_v42, %v736_v37  ;;  %v1072_v53 = vsel %vm1021_vm1, %v1070_v46, %v1071_v49  ;;  %v1074_v60 = vrot.slane %v3280_v57, 1 }
  0x42   : > { %v739_v35 = vshrl.u32 %v3277_v25, 16  ;;  %v725_v38 = vsel %vm533_vm0, %v720_v32, %v724_v28  ;;  %v1067_v39 = vrot.slane %v3273_v33, 1  ;;  %v741_v44 = vshll.u32 %v3277_v25, 16  ;;  %v3286_v1 = vld [vmem:[%s3352_s17 + $0x24] sm:$0xff]   ;;  %3053 = vmatprep.subr.bf16.mxu0 %v3506_v62  ;;  %v3287_v2 = vld [vmem:[%s4140_s1 + $0x14] ss:$0 sps:$4 sm:$0xff]  }
  0x43   : > { %v748_v58 = vrot.slane %v746_v55, 1  ;;  %v3519_v3 = vld [vmem:[%s4140_s1 + $0x8] ss:$0 sps:$4 sm:$0xff]   ;;  %3054 = vmatpush3.bf16.msra.mxu0 %v3506_v62  ;;  %320 = vst.msk [vmem:[#allocation2 + $0x18] sm:$0xff] %vm316_vm2, %v3286_v1  ;;  %v3289_v4 = vld [vmem:[%s3352_s17 + $0x30] sm:$0xff]   ;;  %v3527_v5 = vld [vmem:[%s4140_s1 + $0x18] sm:$0xff]   ;;  %3193 = vmatprep.subr.msk.bf16.mxu1 %vm1247_vm3, %v3287_v2 }
  0x44   : > { %v3534_v7 = vsel %vm1247_vm3, %v3519_v3, 0  ;;  %3194 = vmatprep.subr.msk.bf16.mxu0 %vm1247_vm3, %v3519_v3  ;;  %321 = vst.msk [vmem:[#allocation2 + $0x20] sm:$0xff] %vm316_vm2, %v3289_v4  ;;  %v3291_v8 = vld [vmem:[%s3352_s17 + $0x3c] sm:$0xff]   ;;  %v3292_v9 = vld [vmem:[%s3352_s17 + $0x48] sm:$0xff]   ;;  %v3293_v10 = vld [vmem:[%s3352_s17 + $0x54] sm:$0xff]  }
  0x45   : > { %772 = vrot.lane.b32.xlu0 %v677_v45, %s3314_s19  ;;  %774 = vrot.lane.b32.xlu1 %v689_v51, %s3314_s19  ;;  %v1069_v45 = vsel %vm1021_vm1, %v1067_v39, %v1068_v40  ;;  %v743_v51 = vrot.slane %v741_v44, 1  ;;  %322 = vst.msk [vmem:[#allocation2 + $0x28] sm:$0xff] %vm316_vm2, %v3291_v8  ;;  %323 = vst.msk [vmem:[#allocation2 + $0x30] sm:$0xff] %vm316_vm2, %v3292_v9  ;;  %v3294_v11 = vld [vmem:[%s3352_s17 + $0x60] sm:$0xff]   ;;  %v3296_v12 = vld [vmem:[%s3352_s17 + $0x6c] sm:$0xff]  }
  0x46   : > { %324 = vst.msk [vmem:[#allocation2 + $0x38] sm:$0xff] %vm316_vm2, %v3293_v10  ;;  %325 = vst.msk [vmem:[#allocation2 + $0x40] sm:$0xff] %vm316_vm2, %v3294_v11  ;;  %v3297_v13 = vld [vmem:[%s3352_s17 + $0x78] sm:$0xff]   ;;  %v3298_v14 = vld [vmem:[%s3352_s17 + $0x84] sm:$0xff]  }
  0x47   : > { %3056 = vmatpush3.bf16.msra.mxu0 %v3534_v7  ;;  %326 = vst.msk [vmem:[#allocation2 + $0x48] sm:$0xff] %vm316_vm2, %v3296_v12  ;;  %327 = vst.msk [vmem:[#allocation2 + $0x50] sm:$0xff] %vm316_vm2, %v3297_v13  ;;  %v3301_v17 = vld [vmem:[%s3352_s17 + $0xa8] sm:$0xff]   ;;  %v3302_v18 = vld [vmem:[%s3352_s17 + $0xb4] sm:$0xff]   ;;  %v3315_v13 = vmov 0  }
  0x48   : > { %3089 = vmatprep.subr.bf16.mxu0 %v3527_v5  ;;  %328 = vst.msk [vmem:[#allocation2 + $0x58] sm:$0xff] %vm316_vm2, %v3298_v14  ;;  %331 = vst.msk [vmem:[#allocation2 + $0x70] sm:$0xff] %vm316_vm2, %v3301_v17  ;;  %v3303_v19 = vld [vmem:[%s3352_s17 + $0xc0] sm:$0xff]   ;;  %v3304_v20 = vld [vmem:[%s3352_s17 + $0xcc] sm:$0xff]  }
  0x49   : > { %1098 = vrot.lane.b32.xlu0 %v1057_v54, %s3313_s18  ;;  %1100 = vrot.lane.b32.xlu1 %v1060_v59, %s3313_s18  ;;  %v744_v54 = vor.u32 %v743_v51, %v739_v35  ;;  %v1073_v59 = vrot.slane %v3279_v56, 1  ;;  %332 = vst.msk [vmem:[#allocation2 + $0x78] sm:$0xff] %vm316_vm2, %v3302_v18  ;;  %333 = vst.msk [vmem:[#allocation2 + $0x80] sm:$0xff] %vm316_vm2, %v3303_v19  ;;  %v3295_v30 = vld [vmem:[%s4140_s1 + $0x20] ss:$0 sps:$4 sm:$0xff]  }
  0x4a   : > { %334 = vst.msk [vmem:[#allocation2 + $0x88] sm:$0xff] %vm316_vm2, %v3304_v20  ;;  %v1712_v35 = vsel %vm1247_vm3, %v3295_v30, 0 }
  0x4b   : > { %v749_v63 = vsel %vm533_vm0, %v744_v54, %v748_v58  ;;  %v1075_v0 = vsel %vm1021_vm1, %v1073_v59, %v1074_v60  ;;  %1947 = vst.msk [vmem:[%s3667_s7] sm:$0xf] %vm1946_vm7, %v3315_v13  ;;  %1948 = vst.msk [vmem:[%s3667_s7 + $0x4] sm:$0xf] %vm1946_vm7, %v3315_v13 }
  0x4c   : > { %1950 = vst.msk [vmem:[%s3667_s7 + $0x8] sm:$0x1] %vm1949_vm8, %v3315_v13  ;;  %2816 = vst.msk [vmem:[%s3667_s7 + $0xd4] sm:$0x1] %vm1949_vm8, %v3315_v13 }
  0x4d   : > { %776 = vrot.lane.b32.xlu0 %v701_v6, %s3314_s19  ;;  %778 = vrot.lane.b32.xlu1 %v713_v15, %s3314_s19  ;;  %v1249_v6 = vsel %vm1247_vm3, %v3287_v2, 0  ;;  %v3299_v15 = vld [vmem:[%s3352_s17 + $0x90] sm:$0xff]   ;;  %2814 = vst.msk [vmem:[%s3667_s7 + $0xcc] sm:$0xf] %vm1946_vm7, %v3315_v13 }
  0x4e   : > { %3020 = vmatpush3.bf16.msra.mxu1 %v1249_v6  ;;  %329 = vst.msk [vmem:[#allocation2 + $0x60] sm:$0xff] %vm316_vm2, %v3299_v15  ;;  %v1964_v15 = vld [vmem:[%s3667_s7 + $0x18] sm:$0x1] }
  0x4f   : > { %3125 = vmatprep.subr.bf16.mxu1 %v3506_v62  ;;  %2815 = vst.msk [vmem:[%s3667_s7 + $0xd0] sm:$0xf] %vm1946_vm7, %v3315_v13 }
  0x51   : > { %1102 = vrot.lane.b32.xlu0 %v1063_v16, %s3313_s18  ;;  %1104 = vrot.lane.b32.xlu1 %v1066_v21, %s3313_s18  ;;  %v3300_v16 = vld [vmem:[%s3352_s17 + $0x9c] sm:$0xff]  }
  0x52   : > { %330 = vst.msk [vmem:[#allocation2 + $0x68] sm:$0xff] %vm316_vm2, %v3300_v16  ;;  %v1965_v16 = vsel %vm3680_vm10, 0, %v1964_v15  ;;  %v1958_v18 = vld [vmem:[%s3667_s7] sm:$0x1]  ;;  %v2053_v15 = vld [vmem:[%s3667_s7 + $0xa4] sm:$0x1] }
  0x53   : > { %1966 = vst [vmem:[%s3667_s7 + $0x18] sm:$0x1] %v1965_v16  ;;  %v2014_v20 = vld [vmem:[%s3667_s7 + $0x8] sm:$0x1]  ;;  %v2054_v16 = vsel %vm3689_vm12, 0, %v2053_v15 }
  0x54   : > { %v2009_v19 = vld [vmem:[%s3667_s7 + $0xcc] sm:$0x1]  ;;  %2055 = vst [vmem:[%s3667_s7 + $0xa4] sm:$0x1] %v2054_v16 }
  0x55   : > { %780 = vrot.lane.b32.xlu0 %v725_v38, %s3314_s19  ;;  %782 = vrot.lane.b32.xlu1 %v737_v48, %s3314_s19 }
  0x59   : > { %1106 = vrot.lane.b32.xlu0 %v1069_v45, %s3313_s18  ;;  %1108 = vrot.lane.b32.xlu1 %v1072_v53, %s3313_s18 }
  0x5d   : > { %784 = vrot.lane.b32.xlu0 %v749_v63, %s3314_s19  ;;  %1110 = vrot.lane.b32.xlu1 %v1075_v0, %s3313_s18 }
  0x89   : > { %v1077_v21 = vpop.permute.xlu1 %1076 }
  0x8b   : > { %v751_v22 = vpop.permute.xlu0 %750 }
  0x8c   : > { %805 = vst.msk [vmem:[#allocation2] sm:$0xff] %vm804_vm4, %v751_v22  ;;  %v2010_v22 = vsel %vm3680_vm10, 0, %v2009_v19 }
  0x8d   : > { %1131 = vst.msk [vmem:[#allocation2] sm:$0xff] %vm1130_vm5, %v1077_v21  ;;  %v1959_v21 = vsel %vm3680_vm10, 0, %v1958_v18  ;;  %2011 = vst [vmem:[%s3667_s7 + $0xcc] sm:$0x1] %v2010_v22  ;;  %v2006_v18 = vld [vmem:[%s3667_s7 + $0xc0] sm:$0x1] }
  0x8e   : > { %1960 = vst [vmem:[%s3667_s7] sm:$0x1] %v1959_v21  ;;  %v2007_v19 = vsel %vm3680_vm10, 0, %v2006_v18  ;;  %v2062_v22 = vld [vmem:[%s3667_s7 + $0xc8] sm:$0x1] }
  0x8f   : > { %v753_v23 = vpop.permute.xlu0 %752  ;;  %v755_v24 = vpop.permute.xlu1 %754  ;;  %2008 = vst [vmem:[%s3667_s7 + $0xc0] sm:$0x1] %v2007_v19 }
  0x90   : > { %806 = vst.msk [vmem:[#allocation2 + $0x8] sm:$0xff] %vm804_vm4, %v753_v23  ;;  %807 = vst.msk [vmem:[#allocation2 + $0x10] sm:$0xff] %vm804_vm4, %v755_v24  ;;  %v2015_v23 = vsel %vm3689_vm12, 0, %v2014_v20  ;;  %v2065_v24 = vld [vmem:[%s3667_s7 + $0xd4] sm:$0x1] }
  0x91   : > { %2016 = vst [vmem:[%s3667_s7 + $0x8] sm:$0x1] %v2015_v23  ;;  %v2003_v20 = vld [vmem:[%s3667_s7 + $0xb4] sm:$0x1]  ;;  %v2063_v23 = vsel %vm3689_vm12, 0, %v2062_v22 }
  0x92   : > { %v2004_v21 = vsel %vm3680_vm10, 0, %v2003_v20  ;;  %2064 = vst [vmem:[%s3667_s7 + $0xc8] sm:$0x1] %v2063_v23 }
  0x93   : > { %v1079_v25 = vpop.permute.xlu0 %1078  ;;  %v1081_v27 = vpop.permute.xlu1 %1080  ;;  %2005 = vst [vmem:[%s3667_s7 + $0xb4] sm:$0x1] %v2004_v21 }
  0x94   : > { %1132 = vst.msk [vmem:[#allocation2 + $0x8] sm:$0xff] %vm1130_vm5, %v1079_v25  ;;  %v1149_v26 = vld [vmem:[#allocation2] sm:$0xff]  ;;  %1133 = vst.msk [vmem:[#allocation2 + $0x10] sm:$0xff] %vm1130_vm5, %v1081_v27  ;;  %v2066_v25 = vsel %vm3689_vm12, 0, %v2065_v24  ;;  %v2059_v24 = vld [vmem:[%s3667_s7 + $0xbc] sm:$0x1] }
  0x95   : > { %3057 = vmatprep.mubr.msk.bf16.mxu0 %vm1198_vm6, %v1149_v26  ;;  %v1961_v26 = vld [vmem:[%s3667_s7 + $0xc] sm:$0x1]  ;;  %2067 = vst [vmem:[%s3667_s7 + $0xd4] sm:$0x1] %v2066_v25  ;;  %v2060_v25 = vsel %vm3689_vm12, 0, %v2059_v24 }
  0x96   : > { %v1962_v27 = vsel %vm3680_vm10, 0, %v1961_v26  ;;  %2061 = vst [vmem:[%s3667_s7 + $0xbc] sm:$0x1] %v2060_v25 }
  0x97   : > { %v757_v28 = vpop.permute.xlu0 %756  ;;  %v759_v29 = vpop.permute.xlu1 %758  ;;  %1963 = vst [vmem:[%s3667_s7 + $0xc] sm:$0x1] %v1962_v27 }
  0x98   : > { %808 = vst.msk [vmem:[#allocation2 + $0x18] sm:$0xff] %vm804_vm4, %v757_v28  ;;  %809 = vst.msk [vmem:[#allocation2 + $0x20] sm:$0xff] %vm804_vm4, %v759_v29  ;;  %v2020_v28 = vld [vmem:[%s3667_s7 + $0x20] sm:$0x1]  ;;  %v2017_v29 = vld [vmem:[%s3667_s7 + $0x14] sm:$0x1] }
  0x9b   : > { %v1169_v31 = vld [vmem:[#allocation2 + $0x8] sm:$0xff]  ;;  %v1083_v32 = vpop.permute.xlu0 %1082  ;;  %v1170_v33 = vld [vmem:[#allocation2 + $0x10] sm:$0xff]  ;;  %v1085_v34 = vpop.permute.xlu1 %1084 }
  0x9c   : > { %3021 = vmatprep.mubr.msk.bf16.mxu1 %vm1198_vm6, %v1169_v31  ;;  %3058 = vmatmul.mubr.msk.bf16.vlgmr.msra.gmra.mrb[0].mxu0 %vm1198_vm6, %v1169_v31  ;;  %1134 = vst.msk [vmem:[#allocation2 + $0x18] sm:$0xff] %vm1130_vm5, %v1083_v32  ;;  %1135 = vst.msk [vmem:[#allocation2 + $0x20] sm:$0xff] %vm1130_vm5, %v1085_v34  ;;  %v2018_v31 = vsel %vm3689_vm12, 0, %v2017_v29  ;;  %v1970_v32 = vld [vmem:[%s3667_s7 + $0x30] sm:$0x1] }
  0x9d   : > { %3090 = vmatpush3.bf16.msra.mxu0 %v3527_v5  ;;  %3022 = vmatmul.mubr.msk.bf16.vlgmr.msra.gmra.mrb[0].mxu1 %vm1198_vm6, %v1170_v33  ;;  %2019 = vst [vmem:[%s3667_s7 + $0x14] sm:$0x1] %v2018_v31  ;;  %v1967_v34 = vld [vmem:[%s3667_s7 + $0x24] sm:$0x1] }
  0x9e   : > { %3061 = vmatprep.mubr.msk.bf16.mxu0 %vm1198_vm6, %v1170_v33  ;;  %3127 = vmatpush3.bf16.msra.mxu1 %v3506_v62 }
  0x9f   : > { %3196 = vmatprep.subr.msk.bf16.mxu0 %vm1247_vm3, %v3295_v30  ;;  %3195 = vmatprep.subr.msk.bf16.mxu1 %vm1247_vm3, %v3519_v3  ;;  %v761_v36 = vpop.permute.xlu0 %760  ;;  %v763_v37 = vpop.permute.xlu1 %762  ;;  %v2021_v30 = vsel %vm3689_vm12, 0, %v2020_v28 }
  0xa0   : > { %810 = vst.msk [vmem:[#allocation2 + $0x28] sm:$0xff] %vm804_vm4, %v761_v36  ;;  %811 = vst.msk [vmem:[#allocation2 + $0x30] sm:$0xff] %vm804_vm4, %v763_v37  ;;  %v2026_v36 = vld [vmem:[%s3667_s7 + $0x38] sm:$0x1] }
  0xa1   : > { %3092 = vmatpush3.bf16.msra.mxu0 %v1712_v35  ;;  %2022 = vst [vmem:[%s3667_s7 + $0x20] sm:$0x1] %v2021_v30  ;;  %v1968_v35 = vsel %vm3680_vm10, 0, %v1967_v34  ;;  %v2027_v37 = vsel %vm3689_vm12, 0, %v2026_v36 }
  0xa2   : > { %3128 = vmatpush3.bf16.msra.mxu1 %v3534_v7  ;;  %1969 = vst [vmem:[%s3667_s7 + $0x24] sm:$0x1] %v1968_v35  ;;  %2028 = vst [vmem:[%s3667_s7 + $0x38] sm:$0x1] %v2027_v37 }
  0xa3   : > { %v1171_v38 = vld [vmem:[#allocation2 + $0x18] sm:$0xff]  ;;  %v1087_v39 = vpop.permute.xlu0 %1086  ;;  %v1172_v40 = vld [vmem:[#allocation2 + $0x20] sm:$0xff]  ;;  %v1089_v41 = vpop.permute.xlu1 %1088 }
  0xa4   : > { %3025 = vmatprep.mubr.msk.bf16.mxu1 %vm1198_vm6, %v1171_v38  ;;  %3062 = vmatmul.mubr.msk.bf16.gmra.mrb[4].mxu0 %vm1198_vm6, %v1171_v38  ;;  %1136 = vst.msk [vmem:[#allocation2 + $0x28] sm:$0xff] %vm1130_vm5, %v1087_v39  ;;  %1137 = vst.msk [vmem:[#allocation2 + $0x30] sm:$0xff] %vm1130_vm5, %v1089_v41 }
  0xa5   : > { %3026 = vmatmul.mubr.msk.bf16.gmra.mrb[4].mxu1 %vm1198_vm6, %v1172_v40  ;;  %3065 = vmatprep.mubr.msk.bf16.mxu0 %vm1198_vm6, %v1172_v40 }
  0xa7   : > { %v765_v42 = vpop.permute.xlu0 %764  ;;  %v767_v43 = vpop.permute.xlu1 %766 }
  0xa8   : > { %812 = vst.msk [vmem:[#allocation2 + $0x38] sm:$0xff] %vm804_vm4, %v765_v42  ;;  %813 = vst.msk [vmem:[#allocation2 + $0x40] sm:$0xff] %vm804_vm4, %v767_v43  ;;  %v1973_v42 = vld [vmem:[%s3667_s7 + $0x3c] sm:$0x1]  ;;  %v2857_v22 = vld [vmem:[%s3667_s7 + $0x20] sm:$0x1] }
  0xa9   : > { %v1974_v43 = vsel %vm3680_vm10, 0, %v1973_v42  ;;  %v3856_v42 = vld [vmem:[%s4141_s2] ss:$0 sm:$0xff] }
  0xaa   : > { %1975 = vst [vmem:[%s3667_s7 + $0x3c] sm:$0x1] %v1974_v43 }
  0xab   : > { %v1173_v44 = vld [vmem:[#allocation2 + $0x28] sm:$0xff]  ;;  %v1091_v45 = vpop.permute.xlu0 %1090  ;;  %v1174_v46 = vld [vmem:[#allocation2 + $0x30] sm:$0xff]  ;;  %v1093_v47 = vpop.permute.xlu1 %1092 }
  0xac   : > { %3029 = vmatprep.mubr.msk.bf16.mxu1 %vm1198_vm6, %v1173_v44  ;;  %3066 = vmatmul.mubr.msk.bf16.gmra.mrb[8].mxu0 %vm1198_vm6, %v1173_v44  ;;  %1138 = vst.msk [vmem:[#allocation2 + $0x38] sm:$0xff] %vm1130_vm5, %v1091_v45  ;;  %1139 = vst.msk [vmem:[#allocation2 + $0x40] sm:$0xff] %vm1130_vm5, %v1093_v47 }
  0xad   : > { %3030 = vmatmul.mubr.msk.bf16.gmra.mrb[8].mxu1 %vm1198_vm6, %v1174_v46  ;;  %3069 = vmatprep.mubr.msk.bf16.mxu0 %vm1198_vm6, %v1174_v46 }
  0xaf   : > { %v769_v48 = vpop.permute.xlu0 %768  ;;  %v771_v50 = vpop.permute.xlu1 %770 }
  0xb0   : > { %814 = vst.msk [vmem:[#allocation2 + $0x48] sm:$0xff] %vm804_vm4, %v769_v48  ;;  %815 = vst.msk [vmem:[#allocation2 + $0x50] sm:$0xff] %vm804_vm4, %v771_v50  ;;  %v1982_v48 = vld [vmem:[%s3667_s7 + $0x60] sm:$0x1]  ;;  %v1979_v50 = vld [vmem:[%s3667_s7 + $0x54] sm:$0x1] }
  0xb3   : > { %v1175_v49 = vld [vmem:[#allocation2 + $0x38] sm:$0xff]  ;;  %v1095_v51 = vpop.permute.xlu0 %1094  ;;  %v1176_v52 = vld [vmem:[#allocation2 + $0x40] sm:$0xff]  ;;  %v1097_v53 = vpop.permute.xlu1 %1096 }
  0xb4   : > { %3033 = vmatprep.mubr.msk.bf16.mxu1 %vm1198_vm6, %v1175_v49  ;;  %3070 = vmatmul.mubr.msk.bf16.gmra.mrb[12].mxu0 %vm1198_vm6, %v1175_v49  ;;  %1140 = vst.msk [vmem:[#allocation2 + $0x48] sm:$0xff] %vm1130_vm5, %v1095_v51  ;;  %1141 = vst.msk [vmem:[#allocation2 + $0x50] sm:$0xff] %vm1130_vm5, %v1097_v53  ;;  %v1980_v51 = vsel %vm3680_vm10, 0, %v1979_v50 }
  0xb5   : > { %3093 = vmatprep.mubr.msk.bf16.mxu0 %vm1198_vm6, %v1170_v33  ;;  %3034 = vmatmul.mubr.msk.bf16.gmra.mrb[12].mxu1 %vm1198_vm6, %v1176_v52  ;;  %v1971_v33 = vsel %vm3680_vm10, 0, %v1970_v32  ;;  %1981 = vst [vmem:[%s3667_s7 + $0x54] sm:$0x1] %v1980_v51 }
  0xb6   : > { %1972 = vst [vmem:[%s3667_s7 + $0x30] sm:$0x1] %v1971_v33 }
  0xb7   : > { %v773_v54 = vpop.permute.xlu0 %772  ;;  %v775_v55 = vpop.permute.xlu1 %774 }
  0xb8   : > { %816 = vst.msk [vmem:[#allocation2 + $0x58] sm:$0xff] %vm804_vm4, %v773_v54  ;;  %817 = vst.msk [vmem:[#allocation2 + $0x60] sm:$0xff] %vm804_vm4, %v775_v55  ;;  %v2035_v54 = vld [vmem:[%s3667_s7 + $0x5c] sm:$0x1] }
  0xb9   : > { %v2036_v55 = vsel %vm3689_vm12, 0, %v2035_v54 }
  0xba   : > { %2037 = vst [vmem:[%s3667_s7 + $0x5c] sm:$0x1] %v2036_v55 }
  0xbb   : > { %v1177_v56 = vld [vmem:[#allocation2 + $0x48] sm:$0xff]  ;;  %v1099_v57 = vpop.permute.xlu0 %1098  ;;  %v1101_v58 = vpop.permute.xlu1 %1100  ;;  %v1178_v59 = vld [vmem:[#allocation2 + $0x50] sm:$0xff] }
  0xbc   : > { %3094 = vmatmul.mubr.msk.bf16.vlgmr.msra.gmra.mrb[0].mxu0 %vm1198_vm6, %v1171_v38  ;;  %3037 = vmatprep.mubr.msk.bf16.mxu1 %vm1198_vm6, %v1177_v56  ;;  %1142 = vst.msk [vmem:[#allocation2 + $0x58] sm:$0xff] %vm1130_vm5, %v1099_v57  ;;  %1143 = vst.msk [vmem:[#allocation2 + $0x60] sm:$0xff] %vm1130_vm5, %v1101_v58  ;;  %v2023_v38 = vld [vmem:[%s3667_s7 + $0x2c] sm:$0x1] }
  0xbd   : > { %3097 = vmatprep.mubr.msk.bf16.mxu0 %vm1198_vm6, %v1172_v40  ;;  %3038 = vmatmul.mubr.msk.bf16.gmra.mrb[16].mxu1 %vm1198_vm6, %v1178_v59  ;;  %v2024_v39 = vsel %vm3689_vm12, 0, %v2023_v38  ;;  %v1976_v40 = vld [vmem:[%s3667_s7 + $0x48] sm:$0x1]  ;;  %v1985_v58 = vld [vmem:[%s3667_s7 + $0x6c] sm:$0x1] }
  0xbe   : > { %2025 = vst [vmem:[%s3667_s7 + $0x2c] sm:$0x1] %v2024_v39  ;;  %v1977_v41 = vsel %vm3680_vm10, 0, %v1976_v40 }
  0xbf   : > { %v777_v60 = vpop.permute.xlu0 %776  ;;  %v779_v61 = vpop.permute.xlu1 %778  ;;  %1978 = vst [vmem:[%s3667_s7 + $0x48] sm:$0x1] %v1977_v41 }
  0xc0   : > { %818 = vst.msk [vmem:[#allocation2 + $0x68] sm:$0xff] %vm804_vm4, %v777_v60  ;;  %819 = vst.msk [vmem:[#allocation2 + $0x70] sm:$0xff] %vm804_vm4, %v779_v61  ;;  %v2044_v60 = vld [vmem:[%s3667_s7 + $0x80] sm:$0x1] }
  0xc1   : > { %v2045_v61 = vsel %vm3689_vm12, 0, %v2044_v60 }
  0xc2   : > { %2046 = vst [vmem:[%s3667_s7 + $0x80] sm:$0x1] %v2045_v61 }
  0xc3   : > { %v1179_v62 = vld [vmem:[#allocation2 + $0x58] sm:$0xff]  ;;  %v1103_v63 = vpop.permute.xlu0 %1102  ;;  %v1180_v0 = vld [vmem:[#allocation2 + $0x60] sm:$0xff]  ;;  %v1105_v1 = vpop.permute.xlu1 %1104 }
  0xc4   : > { %3098 = vmatmul.mubr.msk.bf16.gmra.mrb[4].mxu0 %vm1198_vm6, %v1173_v44  ;;  %3041 = vmatprep.mubr.msk.bf16.mxu1 %vm1198_vm6, %v1179_v62  ;;  %1144 = vst.msk [vmem:[#allocation2 + $0x68] sm:$0xff] %vm1130_vm5, %v1103_v63  ;;  %1145 = vst.msk [vmem:[#allocation2 + $0x70] sm:$0xff] %vm1130_vm5, %v1105_v1  ;;  %v2032_v44 = vld [vmem:[%s3667_s7 + $0x50] sm:$0x1] }
  0xc5   : > { %3101 = vmatprep.mubr.msk.bf16.mxu0 %vm1198_vm6, %v1174_v46  ;;  %3042 = vmatmul.mubr.msk.bf16.gmra.mrb[20].mxu1 %vm1198_vm6, %v1180_v0  ;;  %v2033_v45 = vsel %vm3689_vm12, 0, %v2032_v44  ;;  %v2029_v46 = vld [vmem:[%s3667_s7 + $0x44] sm:$0x1] }
  0xc6   : > { %2034 = vst [vmem:[%s3667_s7 + $0x50] sm:$0x1] %v2033_v45  ;;  %v2030_v47 = vsel %vm3689_vm12, 0, %v2029_v46 }
  0xc7   : > { %v781_v2 = vpop.permute.xlu0 %780  ;;  %v783_v4 = vpop.permute.xlu1 %782  ;;  %2031 = vst [vmem:[%s3667_s7 + $0x44] sm:$0x1] %v2030_v47 }
  0xc8   : > { %820 = vst.msk [vmem:[#allocation2 + $0x78] sm:$0xff] %vm804_vm4, %v781_v2  ;;  %821 = vst.msk [vmem:[#allocation2 + $0x80] sm:$0xff] %vm804_vm4, %v783_v4  ;;  %v1991_v2 = vld [vmem:[%s3667_s7 + $0x84] sm:$0x1]  ;;  %v2050_v4 = vld [vmem:[%s3667_s7 + $0x98] sm:$0x1] }
  0xcb   : > { %v1181_v3 = vld [vmem:[#allocation2 + $0x68] sm:$0xff]  ;;  %v1107_v5 = vpop.permute.xlu0 %1106  ;;  %v1182_v6 = vld [vmem:[#allocation2 + $0x70] sm:$0xff]  ;;  %v1109_v7 = vpop.permute.xlu1 %1108 }
  0xcc   : > { %3102 = vmatmul.mubr.msk.bf16.gmra.mrb[8].mxu0 %vm1198_vm6, %v1175_v49  ;;  %3045 = vmatprep.mubr.msk.bf16.mxu1 %vm1198_vm6, %v1181_v3  ;;  %1146 = vst.msk [vmem:[#allocation2 + $0x78] sm:$0xff] %vm1130_vm5, %v1107_v5  ;;  %1147 = vst.msk [vmem:[#allocation2 + $0x80] sm:$0xff] %vm1130_vm5, %v1109_v7  ;;  %v1983_v49 = vsel %vm3680_vm10, 0, %v1982_v48  ;;  %v2051_v5 = vsel %vm3689_vm12, 0, %v2050_v4 }
  0xcd   : > { %3105 = vmatprep.mubr.msk.bf16.mxu0 %vm1198_vm6, %v1176_v52  ;;  %3046 = vmatmul.mubr.msk.bf16.gmra.mrb[24].mxu1 %vm1198_vm6, %v1182_v6  ;;  %1984 = vst [vmem:[%s3667_s7 + $0x60] sm:$0x1] %v1983_v49  ;;  %2052 = vst [vmem:[%s3667_s7 + $0x98] sm:$0x1] %v2051_v5  ;;  %v2854_v5 = vld [vmem:[%s3667_s7 + $0x18] sm:$0xf] }
  0xcf   : > { %v785_v8 = vpop.permute.xlu0 %784  ;;  %v1111_v9 = vpop.permute.xlu1 %1110 }
  0xd0   : > { %822 = vst.msk [vmem:[#allocation2 + $0x88] sm:$0xff] %vm804_vm4, %v785_v8  ;;  %v2000_v8 = vld [vmem:[%s3667_s7 + $0xa8] sm:$0x1] }
  0xd1   : > { %1148 = vst.msk [vmem:[#allocation2 + $0x88] sm:$0xff] %vm1130_vm5, %v1111_v9  ;;  %v2001_v9 = vsel %vm3680_vm10, 0, %v2000_v8 }
  0xd2   : > { %2002 = vst [vmem:[%s3667_s7 + $0xa8] sm:$0x1] %v2001_v9 }
  0xd3   : > { %v1183_v10 = vld [vmem:[#allocation2 + $0x78] sm:$0xff]  ;;  %v1184_v11 = vld [vmem:[#allocation2 + $0x80] sm:$0xff] }
  0xd4   : > { %3106 = vmatmul.mubr.msk.bf16.gmra.mrb[12].mxu0 %vm1198_vm6, %v1177_v56  ;;  %3049 = vmatprep.mubr.msk.bf16.mxu1 %vm1198_vm6, %v1183_v10 }
  0xd5   : > { %3109 = vmatprep.mubr.msk.bf16.mxu0 %vm1198_vm6, %v1178_v59  ;;  %3050 = vmatmul.mubr.msk.bf16.gmra.mrb[28].mxu1 %vm1198_vm6, %v1184_v11 }
  0xd6   : > { %3073 = vmatprep.mubr.msk.bf16.mxu1 %vm1198_vm6, %v1176_v52  ;;  %v2038_v52 = vld [vmem:[%s3667_s7 + $0x68] sm:$0x1] }
  0xd7   : > { %v2039_v53 = vsel %vm3689_vm12, 0, %v2038_v52 }
  0xd8   : > { %v1649_v12 = vld [vmem:[#allocation2 + $0x88] sm:$0xff]  ;;  %2040 = vst [vmem:[%s3667_s7 + $0x68] sm:$0x1] %v2039_v53 }
  0xdc   : > { %3110 = vmatmul.mubr.msk.bf16.gmra.mrb[16].mxu0 %vm1198_vm6, %v1179_v62 }
  0xdd   : > { %3113 = vmatprep.mubr.msk.bf16.mxu0 %vm1198_vm6, %v1180_v0  ;;  %3074 = vmatmul.mubr.msk.bf16.vlgmr.msra.gmra.mrb[16].mxu1 %vm1198_vm6, %v1177_v56  ;;  %v1988_v56 = vld [vmem:[%s3667_s7 + $0x78] sm:$0x1] }
  0xde   : > { %3077 = vmatprep.mubr.msk.bf16.mxu1 %vm1198_vm6, %v1178_v59  ;;  %v1989_v57 = vsel %vm3680_vm10, 0, %v1988_v56  ;;  %v1986_v59 = vsel %vm3680_vm10, 0, %v1985_v58 }
  0xdf   : > { %1990 = vst [vmem:[%s3667_s7 + $0x78] sm:$0x1] %v1989_v57  ;;  %1987 = vst [vmem:[%s3667_s7 + $0x6c] sm:$0x1] %v1986_v59 }
  0xe4   : > { %3114 = vmatmul.mubr.msk.bf16.gmra.mrb[20].mxu0 %vm1198_vm6, %v1181_v3 }
  0xe5   : > { %3117 = vmatprep.mubr.msk.bf16.mxu0 %vm1198_vm6, %v1182_v6  ;;  %3078 = vmatmul.mubr.msk.bf16.gmra.mrb[20].mxu1 %vm1198_vm6, %v1179_v62  ;;  %v2041_v62 = vld [vmem:[%s3667_s7 + $0x74] sm:$0x1] }
  0xe6   : > { %3081 = vmatprep.mubr.msk.bf16.mxu1 %vm1198_vm6, %v1180_v0  ;;  %v2042_v63 = vsel %vm3689_vm12, 0, %v2041_v62  ;;  %v1994_v0 = vld [vmem:[%s3667_s7 + $0x90] sm:$0x1] }
  0xe7   : > { %2043 = vst [vmem:[%s3667_s7 + $0x74] sm:$0x1] %v2042_v63  ;;  %v1995_v1 = vsel %vm3680_vm10, 0, %v1994_v0 }
  0xe8   : > { %1996 = vst [vmem:[%s3667_s7 + $0x90] sm:$0x1] %v1995_v1 }
  0xec   : > { %3118 = vmatmul.mubr.msk.bf16.gmra.mrb[24].mxu0 %vm1198_vm6, %v1183_v10 }
  0xed   : > { %3121 = vmatprep.mubr.msk.bf16.mxu0 %vm1198_vm6, %v1184_v11  ;;  %3082 = vmatmul.mubr.msk.bf16.gmra.mrb[24].mxu1 %vm1198_vm6, %v1181_v3  ;;  %v1992_v3 = vsel %vm3680_vm10, 0, %v1991_v2 }
  0xee   : > { %3085 = vmatprep.mubr.msk.bf16.mxu1 %vm1198_vm6, %v1182_v6  ;;  %1993 = vst [vmem:[%s3667_s7 + $0x84] sm:$0x1] %v1992_v3  ;;  %v2047_v6 = vld [vmem:[%s3667_s7 + $0x8c] sm:$0x1] }
  0xef   : > { %v2048_v7 = vsel %vm3689_vm12, 0, %v2047_v6 }
  0xf0   : > { %2049 = vst [vmem:[%s3667_s7 + $0x8c] sm:$0x1] %v2048_v7 }
  0xf4   : > { %3122 = vmatmul.mubr.msk.bf16.gmra.mrb[28].mxu0 %vm1198_vm6, %v1649_v12  ;;  %v2056_v12 = vld [vmem:[%s3667_s7 + $0xb0] sm:$0x1] }
  0xf5   : > { %3086 = vmatmul.mubr.msk.bf16.gmra.mrb[28].mxu1 %vm1198_vm6, %v1183_v10  ;;  %v1997_v10 = vld [vmem:[%s3667_s7 + $0x9c] sm:$0x1]  ;;  %v2057_v13 = vsel %vm3689_vm12, 0, %v2056_v12 }
  0xf6   : > { %v1998_v11 = vsel %vm3680_vm10, 0, %v1997_v10  ;;  %2058 = vst [vmem:[%s3667_s7 + $0xb0] sm:$0x1] %v2057_v13  ;;  %v2849_v13 = vld [vmem:[%s3667_s7 + $0xc] sm:$0xf] }
  0xf7   : > { %1999 = vst [vmem:[%s3667_s7 + $0x9c] sm:$0x1] %v1998_v11 }
 0x170   : > { %v3023_v26 = vpop.f32.mrb[0].mxu1 }
 0x171   : > { %v1285_v27 = vpop.f32.mrb[1].mxu1 }
 0x172   : > { %v3024_v28 = vpop.f32.mrb[2].mxu1 }
 0x173   : > { %v1288_v29 = vpop.f32.mrb[3].mxu1 }
 0x178   : > { %v3027_v30 = vpop.f32.mrb[4].mxu1 }
 0x179   : > { %v1301_v31 = vpop.f32.mrb[5].mxu1 }
 0x17a   : > { %v3833_v32 = vpop.f32.mrb[6].mxu1 }
 0x17b   : > { %v3835_v33 = vpop.f32.mrb[7].mxu1 }
 0x180   : > { %v3837_v34 = vpop.f32.mrb[8].mxu1 }
 0x181   : > { %v3839_v35 = vpop.f32.mrb[9].mxu1 }
 0x182   : > { %v3841_v36 = vpop.f32.mrb[10].mxu1 }
 0x183   : > { %v3843_v37 = vpop.f32.mrb[11].mxu1 }
 0x188   : > { %v3845_v17 = vpop.f32.mrb[12].mxu1 }
 0x189   : > { %v3847_v38 = vpop.f32.mrb[13].mxu1 }
 0x18a   : > { %v3849_v39 = vpop.f32.mrb[14].mxu1 }
 0x18b   : > { %v3851_v40 = vpop.f32.mrb[15].mxu1 }
 0x18f   : > { %v3095_v41 = vpop.f32.mrb[0].mxu0 }
 0x190   : > { %v3129_v43 = vadd.f32 %v3095_v41, %v3023_v26  ;;  %v1748_v44 = vpop.f32.mrb[1].mxu0 }
 0x191   : > { %v3130_v45 = vadd.f32 %v1748_v44, %v1285_v27  ;;  %v3096_v46 = vpop.f32.mrb[2].mxu0 }
 0x192   : > { %v1916_v47 = vadd.f32 %v3129_v43, %v3856_v42  ;;  %v3131_v48 = vadd.f32 %v3096_v46, %v3024_v28  ;;  %v1751_v49 = vpop.f32.mrb[3].mxu0  ;;  %v2852_v28 = vld [vmem:[%s3667_s7 + $0x14] sm:$0x1] }
 0x193   : > { %v1914_v50 = vadd.f32 %v3130_v45, %v3856_v42  ;;  %v3132_v51 = vadd.f32 %v1751_v49, %v1288_v29 }
 0x194   : > { %v2933_v52 = vpack.c.bf16 %v1916_v47, %v1916_v47  ;;  %v1917_v53 = vadd.f32 %v3131_v48, %v3856_v42 }
 0x195   : > { %v2931_v54 = vpack.c.bf16 %v1914_v50, %v1914_v50  ;;  %v1915_v55 = vadd.f32 %v3132_v51, %v3856_v42 }
 0x196   : > { %v2184_v56 = vshrl.u32 %v2933_v52, 16  ;;  %v2934_v57 = vpack.c.bf16 %v1917_v53, %v1917_v53  ;;  %v2187_v58 = vshll.u32 %v2933_v52, 16 }
 0x197   : > { %v2167_v59 = vshrl.u32 %v2931_v54, 16  ;;  %v2170_v60 = vshll.u32 %v2931_v54, 16  ;;  %v2932_v61 = vpack.c.bf16 %v1915_v55, %v1915_v55  ;;  %v3099_v62 = vpop.f32.mrb[4].mxu0 }
 0x198   : > { %v2186_v63 = vrot.slane %v2184_v56, 7  ;;  %v2192_v0 = vshrl.u32 %v2934_v57, 16  ;;  %v2195_v1 = vshll.u32 %v2934_v57, 16  ;;  %v3133_v2 = vadd.f32 %v3099_v62, %v3027_v30  ;;  %v1764_v3 = vpop.f32.mrb[5].mxu0  ;;  %v2864_v57 = vld [vmem:[%s3667_s7 + $0x30] sm:$0xf] }
 0x199   : > { %v2169_v6 = vrot.slane %v2167_v59, 7  ;;  %v2175_v7 = vshrl.u32 %v2932_v61, 16  ;;  %v2178_v8 = vshll.u32 %v2932_v61, 16  ;;  %v3134_v9 = vadd.f32 %v1764_v3, %v1301_v31  ;;  %v3100_v10 = vpop.f32.mrb[6].mxu0 }
 0x19a   : > { %v2189_v11 = vor.u32 %v2187_v58, %v2186_v63  ;;  %v2190_v12 = vrot.slane %v2186_v63, 4  ;;  %v2194_v15 = vrot.slane %v2192_v0, 7  ;;  %v1920_v16 = vadd.f32 %v3133_v2, %v3856_v42  ;;  %v1767_v18 = vpop.f32.mrb[7].mxu0  ;;  %v2859_v0 = vld [vmem:[%s3667_s7 + $0x24] sm:$0xf] }
 0x19b   : > { %v2172_v19 = vor.u32 %v2170_v60, %v2169_v6  ;;  %v2173_v20 = vrot.slane %v2169_v6, 4  ;;  %v2177_v23 = vrot.slane %v2175_v7, 7  ;;  %v1918_v24 = vadd.f32 %v3134_v9, %v3856_v42 }
 0x19c   : > { %v2497_v25 = vsel %vm3864_vm14, %v2189_v11, %v2854_v5  ;;  %v2197_v26 = vor.u32 %v2195_v1, %v2194_v15  ;;  %v2199_v27 = vrot.slane %v2194_v15, 4  ;;  %v2937_v29 = vpack.c.bf16 %v1920_v16, %v1920_v16 }
 0x19d   : > { %2855 = vst [vmem:[%s3667_s7 + $0x18] sm:$0xf] %v2497_v25  ;;  %v2490_v30 = vsel %vm3864_vm14, %v2172_v19, %v2849_v13  ;;  %v2180_v31 = vor.u32 %v2178_v8, %v2177_v23  ;;  %v2182_v41 = vrot.slane %v2177_v23, 4  ;;  %v2935_v43 = vpack.c.bf16 %v1918_v24, %v1918_v24  ;;  %v2867_v19 = vld [vmem:[%s3667_s7 + $0x38] sm:$0x1] }
 0x19e   : > { %2850 = vst [vmem:[%s3667_s7 + $0xc] sm:$0xf] %v2490_v30  ;;  %v2198_v44 = vsel %vm3873_vm15, %v2190_v12, %v2197_v26  ;;  %v2501_v45 = vsel %vm3680_vm10, %v2199_v27, %v2857_v22  ;;  %v2218_v46 = vshrl.u32 %v2937_v29, 16  ;;  %v2221_v49 = vshll.u32 %v2937_v29, 16  ;;  %v2862_v27 = vld [vmem:[%s3667_s7 + $0x2c] sm:$0x1] }
 0x19f   : > { %2856 = vst.msk [vmem:[%s3667_s7 + $0x1c] sm:$0xf] %vm1946_vm7, %v2198_v44  ;;  %2858 = vst [vmem:[%s3667_s7 + $0x20] sm:$0x1] %v2501_v45  ;;  %v2181_v47 = vsel %vm3873_vm15, %v2173_v20, %v2180_v31  ;;  %v2494_v48 = vsel %vm3680_vm10, %v2182_v41, %v2852_v28  ;;  %v2201_v50 = vshrl.u32 %v2935_v43, 16  ;;  %v3103_v51 = vpop.f32.mrb[8].mxu0  ;;  %v3135_v53 = vadd.f32 %v3100_v10, %v3833_v32 }
 0x1a0   : > { %2851 = vst.msk [vmem:[%s3667_s7 + $0x10] sm:$0xf] %vm1946_vm7, %v2181_v47  ;;  %2853 = vst [vmem:[%s3667_s7 + $0x14] sm:$0x1] %v2494_v48  ;;  %v2220_v52 = vrot.slane %v2218_v46, 7  ;;  %v3136_v54 = vadd.f32 %v1767_v18, %v3835_v33  ;;  %v3137_v55 = vadd.f32 %v3103_v51, %v3837_v34  ;;  %v1780_v56 = vpop.f32.mrb[9].mxu0 }
 0x1a1   : > { %v2203_v58 = vrot.slane %v2201_v50, 7  ;;  %v2204_v59 = vshll.u32 %v2935_v43, 16  ;;  %v3138_v60 = vadd.f32 %v1780_v56, %v3839_v35  ;;  %v3104_v61 = vpop.f32.mrb[10].mxu0  ;;  %v1921_v1 = vadd.f32 %v3135_v53, %v3856_v42  ;;  %v2874_v31 = vld [vmem:[%s3667_s7 + $0x48] sm:$0xf] }
 0x1a2   : > { %v2223_v62 = vor.u32 %v2221_v49, %v2220_v52  ;;  %v2224_v63 = vrot.slane %v2220_v52, 4  ;;  %v1919_v32 = vadd.f32 %v3136_v54, %v3856_v42  ;;  %v1783_v2 = vpop.f32.mrb[11].mxu0  ;;  %v1924_v34 = vadd.f32 %v3137_v55, %v3856_v42  ;;  %v2869_v50 = vld [vmem:[%s3667_s7 + $0x3c] sm:$0xf] }
 0x1a3   : > { %v2206_v33 = vor.u32 %v2204_v59, %v2203_v58  ;;  %v2207_v3 = vrot.slane %v2203_v58, 4  ;;  %v1922_v5 = vadd.f32 %v3138_v60, %v3856_v42  ;;  %v2938_v6 = vpack.c.bf16 %v1921_v1, %v1921_v1 }
 0x1a4   : > { %v2511_v35 = vsel %vm3864_vm14, %v2223_v62, %v2864_v57  ;;  %v2936_v7 = vpack.c.bf16 %v1919_v32, %v1919_v32  ;;  %v3139_v8 = vadd.f32 %v3104_v61, %v3841_v36  ;;  %v2941_v10 = vpack.c.bf16 %v1924_v34, %v1924_v34  ;;  %v2872_v34 = vld [vmem:[%s3667_s7 + $0x44] sm:$0x1] }
 0x1a5   : > { %2865 = vst [vmem:[%s3667_s7 + $0x30] sm:$0xf] %v2511_v35  ;;  %v2504_v9 = vsel %vm3864_vm14, %v2206_v33, %v2859_v0  ;;  %v2939_v11 = vpack.c.bf16 %v1922_v5, %v1922_v5  ;;  %v3140_v12 = vadd.f32 %v1783_v2, %v3843_v37  ;;  %v2226_v13 = vshrl.u32 %v2938_v6, 16 }
 0x1a6   : > { %2860 = vst [vmem:[%s3667_s7 + $0x24] sm:$0xf] %v2504_v9  ;;  %v2229_v15 = vshll.u32 %v2938_v6, 16  ;;  %v2209_v16 = vshrl.u32 %v2936_v7, 16  ;;  %v2212_v18 = vshll.u32 %v2936_v7, 16  ;;  %v2252_v20 = vshrl.u32 %v2941_v10, 16 }
 0x1a7   : > { %v2255_v22 = vshll.u32 %v2941_v10, 16  ;;  %v2235_v23 = vshrl.u32 %v2939_v11, 16  ;;  %v2238_v36 = vshll.u32 %v2939_v11, 16  ;;  %v3107_v24 = vpop.f32.mrb[12].mxu0  ;;  %v2228_v25 = vrot.slane %v2226_v13, 7 }
 0x1a8   : > { %v2211_v26 = vrot.slane %v2209_v16, 7  ;;  %v1925_v28 = vadd.f32 %v3139_v8, %v3856_v42  ;;  %v1923_v37 = vadd.f32 %v3140_v12, %v3856_v42  ;;  %v1796_v29 = vpop.f32.mrb[13].mxu0  ;;  %v3922_v30 = vrot.slane %v2252_v20, 7 }
 0x1a9   : > { %v3925_v41 = vrot.slane %v2235_v23, 7  ;;  %v3141_v43 = vadd.f32 %v3107_v24, %v3845_v17  ;;  %v3142_v44 = vadd.f32 %v1796_v29, %v3847_v38  ;;  %v3108_v45 = vpop.f32.mrb[14].mxu0  ;;  %v2231_v46 = vor.u32 %v2229_v15, %v2228_v25 }
 0x1aa   : > { %v2233_v47 = vrot.slane %v2228_v25, 4  ;;  %v2214_v48 = vor.u32 %v2212_v18, %v2211_v26  ;;  %v2216_v49 = vrot.slane %v2211_v26, 4  ;;  %v1799_v51 = vpop.f32.mrb[15].mxu0  ;;  %v2257_v52 = vor.u32 %v2255_v22, %v3922_v30 }
 0x1ab   : > { %v2240_v53 = vor.u32 %v2238_v36, %v3925_v41  ;;  %v2232_v17 = vsel %vm3873_vm15, %v2224_v63, %v2231_v46  ;;  %v2942_v58 = vpack.c.bf16 %v1925_v28, %v1925_v28  ;;  %v2940_v59 = vpack.c.bf16 %v1923_v37, %v1923_v37 }
 0x1ac   : > { %v2515_v38 = vsel %vm3680_vm10, %v2233_v47, %v2867_v19  ;;  %v2215_v54 = vsel %vm3873_vm15, %v2207_v3, %v2214_v48  ;;  %v2508_v55 = vsel %vm3680_vm10, %v2216_v49, %v2862_v27  ;;  %2866 = vst.msk [vmem:[%s3667_s7 + $0x34] sm:$0xf] %vm1946_vm7, %v2232_v17  ;;  %v2525_v56 = vsel %vm3864_vm14, %v2257_v52, %v2874_v31  ;;  %v2877_v3 = vld [vmem:[%s3667_s7 + $0x50] sm:$0x1]  ;;  %v2879_v31 = vld [vmem:[%s3667_s7 + $0x54] sm:$0xf] }
 0x1ad   : > { %2868 = vst [vmem:[%s3667_s7 + $0x38] sm:$0x1] %v2515_v38  ;;  %2861 = vst.msk [vmem:[%s3667_s7 + $0x28] sm:$0xf] %vm1946_vm7, %v2215_v54  ;;  %v2518_v57 = vsel %vm3864_vm14, %v2240_v53, %v2869_v50  ;;  %v1928_v60 = vadd.f32 %v3141_v43, %v3856_v42  ;;  %v1926_v61 = vadd.f32 %v3142_v44, %v3856_v42  ;;  %v2258_v0 = vrot.slane %v3922_v30, 4 }
 0x1ae   : > { %2863 = vst [vmem:[%s3667_s7 + $0x2c] sm:$0x1] %v2508_v55  ;;  %2875 = vst [vmem:[%s3667_s7 + $0x48] sm:$0xf] %v2525_v56  ;;  %v3143_v62 = vadd.f32 %v3108_v45, %v3849_v39  ;;  %v3144_v63 = vadd.f32 %v1799_v51, %v3851_v40  ;;  %v2241_v1 = vrot.slane %v3925_v41, 4  ;;  %v2260_v32 = vshrl.u32 %v2942_v58, 16 }
 0x1af   : > { %2870 = vst [vmem:[%s3667_s7 + $0x3c] sm:$0xf] %v2518_v57  ;;  %v2243_v2 = vshrl.u32 %v2940_v59, 16  ;;  %v3111_v33 = vpop.f32.mrb[16].mxu0  ;;  %v2945_v5 = vpack.c.bf16 %v1928_v60, %v1928_v60  ;;  %v2943_v35 = vpack.c.bf16 %v1926_v61, %v1926_v61  ;;  %v2263_v39 = vshll.u32 %v2942_v58, 16 }
 0x1b0   : > { %v1929_v6 = vadd.f32 %v3143_v62, %v3856_v42  ;;  %v1927_v7 = vadd.f32 %v3144_v63, %v3856_v42  ;;  %v1812_v8 = vpop.f32.mrb[17].mxu0  ;;  %v2262_v9 = vrot.slane %v2260_v32, 7  ;;  %v2246_v40 = vshll.u32 %v2940_v59, 16  ;;  %v2884_v30 = vld [vmem:[%s3667_s7 + $0x60] sm:$0xf]  ;;  %v3075_v51 = vpop.f32.mrb[16].mxu1 }
 0x1b1   : > { %v2245_v10 = vrot.slane %v2243_v2, 7  ;;  %v3112_v11 = vpop.f32.mrb[18].mxu0  ;;  %v2286_v12 = vshrl.u32 %v2945_v5, 16  ;;  %v2289_v13 = vshll.u32 %v2945_v5, 16  ;;  %v2269_v15 = vshrl.u32 %v2943_v35, 16  ;;  %v1570_v55 = vpop.f32.mrb[17].mxu1 }
 0x1b2   : > { %v2272_v16 = vshll.u32 %v2943_v35, 16  ;;  %v1815_v18 = vpop.f32.mrb[19].mxu0  ;;  %v2265_v19 = vor.u32 %v2263_v39, %v2262_v9  ;;  %v2267_v20 = vrot.slane %v2262_v9, 4  ;;  %v2946_v25 = vpack.c.bf16 %v1929_v6, %v1929_v6  ;;  %v2887_v50 = vld [vmem:[%s3667_s7 + $0x68] sm:$0x1]  ;;  %v3076_v61 = vpop.f32.mrb[18].mxu1 }
 0x1b3   : > { %v2248_v22 = vor.u32 %v2246_v40, %v2245_v10  ;;  %v2250_v23 = vrot.slane %v2245_v10, 4  ;;  %v2288_v36 = vrot.slane %v2286_v12, 7  ;;  %v2271_v24 = vrot.slane %v2269_v15, 7  ;;  %v2882_v59 = vld [vmem:[%s3667_s7 + $0x5c] sm:$0x1]  ;;  %v1573_v2 = vpop.f32.mrb[19].mxu1 }
 0x1b4   : > { %v2944_v26 = vpack.c.bf16 %v1927_v7, %v1927_v7  ;;  %v2266_v27 = vsel %vm3873_vm15, %v2258_v0, %v2265_v19  ;;  %v2529_v28 = vsel %vm3680_vm10, %v2267_v20, %v2877_v3  ;;  %v2294_v44 = vshrl.u32 %v2946_v25, 16  ;;  %v2894_v19 = vld [vmem:[%s3667_s7 + $0x78] sm:$0xf]  ;;  %v2889_v20 = vld [vmem:[%s3667_s7 + $0x6c] sm:$0xf] }
 0x1b5   : > { %v2249_v37 = vsel %vm3873_vm15, %v2241_v1, %v2248_v22  ;;  %v2522_v29 = vsel %vm3680_vm10, %v2250_v23, %v2872_v34  ;;  %2876 = vst.msk [vmem:[%s3667_s7 + $0x4c] sm:$0xf] %vm1946_vm7, %v2266_v27  ;;  %2878 = vst [vmem:[%s3667_s7 + $0x50] sm:$0x1] %v2529_v28  ;;  %v2291_v41 = vor.u32 %v2289_v13, %v2288_v36  ;;  %v2297_v49 = vshll.u32 %v2946_v25, 16 }
 0x1b6   : > { %2871 = vst.msk [vmem:[%s3667_s7 + $0x40] sm:$0xf] %vm1946_vm7, %v2249_v37  ;;  %2873 = vst [vmem:[%s3667_s7 + $0x44] sm:$0x1] %v2522_v29  ;;  %v2274_v43 = vor.u32 %v2272_v16, %v2271_v24  ;;  %v2277_v45 = vshrl.u32 %v2944_v26, 16  ;;  %v2296_v53 = vrot.slane %v2294_v44, 7  ;;  %v3145_v54 = vadd.f32 %v3111_v33, %v3075_v51 }
 0x1b7   : > { %v3115_v46 = vpop.f32.mrb[20].mxu0  ;;  %v2539_v47 = vsel %vm3864_vm14, %v2291_v41, %v2884_v30  ;;  %v2280_v38 = vshll.u32 %v2944_v26, 16  ;;  %v2292_v57 = vrot.slane %v2288_v36, 4  ;;  %v2275_v58 = vrot.slane %v2271_v24, 4 }
 0x1b8   : > { %v2532_v48 = vsel %vm3864_vm14, %v2274_v43, %v2879_v31  ;;  %v1828_v52 = vpop.f32.mrb[21].mxu0  ;;  %2885 = vst [vmem:[%s3667_s7 + $0x60] sm:$0xf] %v2539_v47  ;;  %v2279_v17 = vrot.slane %v2277_v45, 7  ;;  %v3146_v60 = vadd.f32 %v1812_v8, %v1570_v55  ;;  %v2299_v63 = vor.u32 %v2297_v49, %v2296_v53  ;;  %v3079_v15 = vpop.f32.mrb[20].mxu1 }
 0x1b9   : > { %2880 = vst [vmem:[%s3667_s7 + $0x54] sm:$0xf] %v2532_v48  ;;  %v3985_v56 = vpop.f32.mrb[22].mxu0  ;;  %v2301_v0 = vrot.slane %v2296_v53, 4  ;;  %v1932_v33 = vadd.f32 %v3145_v54, %v3856_v42  ;;  %v3147_v34 = vadd.f32 %v3112_v11, %v3076_v61  ;;  %v3148_v5 = vadd.f32 %v1815_v18, %v1573_v2  ;;  %v1586_v24 = vpop.f32.mrb[21].mxu1 }
 0x1ba   : > { %v1831_v62 = vpop.f32.mrb[23].mxu0  ;;  %v2282_v1 = vor.u32 %v2280_v38, %v2279_v17  ;;  %v2284_v32 = vrot.slane %v2279_v17, 4  ;;  %v1930_v3 = vadd.f32 %v3146_v60, %v3856_v42  ;;  %v2300_v35 = vsel %vm3873_vm15, %v2292_v57, %v2299_v63  ;;  %v3080_v29 = vpop.f32.mrb[22].mxu1  ;;  %v2897_v54 = vld [vmem:[%s3667_s7 + $0x80] sm:$0x1] }
 0x1bb   : > { %v2543_v6 = vsel %vm3680_vm10, %v2301_v0, %v2887_v50  ;;  %2886 = vst.msk [vmem:[%s3667_s7 + $0x64] sm:$0xf] %vm1946_vm7, %v2300_v35  ;;  %v2949_v9 = vpack.c.bf16 %v1932_v33, %v1932_v33  ;;  %v1933_v10 = vadd.f32 %v3147_v34, %v3856_v42  ;;  %v1931_v40 = vadd.f32 %v3148_v5, %v3856_v42  ;;  %v1589_v45 = vpop.f32.mrb[23].mxu1  ;;  %v2892_v55 = vld [vmem:[%s3667_s7 + $0x74] sm:$0x1] }
 0x1bc   : > { %v2283_v7 = vsel %vm3873_vm15, %v2275_v58, %v2282_v1  ;;  %v2536_v8 = vsel %vm3680_vm10, %v2284_v32, %v2882_v59  ;;  %2888 = vst [vmem:[%s3667_s7 + $0x68] sm:$0x1] %v2543_v6  ;;  %v2947_v39 = vpack.c.bf16 %v1930_v3, %v1930_v3  ;;  %v3149_v36 = vadd.f32 %v3115_v46, %v3079_v15 }
 0x1bd   : > { %2881 = vst.msk [vmem:[%s3667_s7 + $0x58] sm:$0xf] %vm1946_vm7, %v2283_v7  ;;  %2883 = vst [vmem:[%s3667_s7 + $0x5c] sm:$0x1] %v2536_v8  ;;  %v2320_v12 = vshrl.u32 %v2949_v9, 16  ;;  %v2323_v18 = vshll.u32 %v2949_v9, 16  ;;  %v2950_v22 = vpack.c.bf16 %v1933_v10, %v1933_v10  ;;  %v2948_v23 = vpack.c.bf16 %v1931_v40, %v1931_v40 }
 0x1be   : > { %v2303_v13 = vshrl.u32 %v2947_v39, 16  ;;  %v2306_v28 = vshll.u32 %v2947_v39, 16  ;;  %v3150_v37 = vadd.f32 %v1828_v52, %v1586_v24  ;;  %v1936_v53 = vadd.f32 %v3149_v36, %v3856_v42 }
 0x1bf   : > { %v4006_v11 = vpop.f32.mrb[24].mxu0  ;;  %v2322_v26 = vrot.slane %v2320_v12, 7  ;;  %v2328_v31 = vshrl.u32 %v2950_v22, 16  ;;  %v2331_v41 = vshll.u32 %v2950_v22, 16  ;;  %v2311_v43 = vshrl.u32 %v2948_v23, 16 }
 0x1c0   : > { %v4008_v16 = vpop.f32.mrb[25].mxu0  ;;  %v2305_v27 = vrot.slane %v2303_v13, 7  ;;  %v2314_v44 = vshll.u32 %v2948_v23, 16  ;;  %v1934_v52 = vadd.f32 %v3150_v37, %v3856_v42  ;;  %v3151_v57 = vadd.f32 %v3985_v56, %v3080_v29  ;;  %v3083_v56 = vpop.f32.mrb[24].mxu1  ;;  %v2904_v23 = vld [vmem:[%s3667_s7 + $0x90] sm:$0xf] }
 0x1c1   : > { %v4012_v25 = vpop.f32.mrb[26].mxu0  ;;  %v2325_v47 = vor.u32 %v2323_v18, %v2322_v26  ;;  %v2326_v46 = vrot.slane %v2322_v26, 4  ;;  %v2330_v50 = vrot.slane %v2328_v31, 7  ;;  %v2313_v51 = vrot.slane %v2311_v43, 7  ;;  %v1602_v6 = vpop.f32.mrb[25].mxu1 }
 0x1c2   : > { %v1847_v30 = vpop.f32.mrb[27].mxu0  ;;  %v2308_v48 = vor.u32 %v2306_v28, %v2305_v27  ;;  %v2309_v49 = vrot.slane %v2305_v27, 4  ;;  %v3152_v58 = vadd.f32 %v1831_v62, %v1589_v45  ;;  %v2953_v1 = vpack.c.bf16 %v1936_v53, %v1936_v53  ;;  %v3084_v40 = vpop.f32.mrb[26].mxu1  ;;  %v2899_v27 = vld [vmem:[%s3667_s7 + $0x84] sm:$0xf] }
 0x1c3   : > { %v2553_v17 = vsel %vm3864_vm14, %v2325_v47, %v2894_v19  ;;  %v2333_v59 = vor.u32 %v2331_v41, %v2330_v50  ;;  %v2335_v60 = vrot.slane %v2330_v50, 4  ;;  %v2316_v61 = vor.u32 %v2314_v44, %v2313_v51 }
 0x1c4   : > { %v2546_v38 = vsel %vm3864_vm14, %v2308_v48, %v2889_v20  ;;  %2895 = vst [vmem:[%s3667_s7 + $0x78] sm:$0xf] %v2553_v17  ;;  %v2318_v63 = vrot.slane %v2313_v51, 4  ;;  %v2951_v32 = vpack.c.bf16 %v1934_v52, %v1934_v52  ;;  %v1937_v2 = vadd.f32 %v3151_v57, %v3856_v42  ;;  %v1605_v20 = vpop.f32.mrb[27].mxu1  ;;  %v2907_v48 = vld [vmem:[%s3667_s7 + $0x98] sm:$0x1] }
 0x1c5   : > { %2890 = vst [vmem:[%s3667_s7 + $0x6c] sm:$0xf] %v2546_v38  ;;  %v1935_v33 = vadd.f32 %v3152_v58, %v3856_v42  ;;  %v2334_v3 = vsel %vm3873_vm15, %v2326_v46, %v2333_v59  ;;  %v2557_v34 = vsel %vm3680_vm10, %v2335_v60, %v2897_v54  ;;  %v2317_v5 = vsel %vm3873_vm15, %v2309_v49, %v2316_v61  ;;  %v2902_v49 = vld [vmem:[%s3667_s7 + $0x8c] sm:$0x1] }
 0x1c6   : > { %v2550_v35 = vsel %vm3680_vm10, %v2318_v63, %v2892_v55  ;;  %2896 = vst.msk [vmem:[%s3667_s7 + $0x7c] sm:$0xf] %vm1946_vm7, %v2334_v3  ;;  %2898 = vst [vmem:[%s3667_s7 + $0x80] sm:$0x1] %v2557_v34  ;;  %v2354_v8 = vshrl.u32 %v2953_v1, 16  ;;  %v2357_v9 = vshll.u32 %v2953_v1, 16  ;;  %v2954_v13 = vpack.c.bf16 %v1937_v2, %v1937_v2 }
 0x1c7   : > { %v4025_v0 = vpop.f32.mrb[28].mxu0  ;;  %2891 = vst.msk [vmem:[%s3667_s7 + $0x70] sm:$0xf] %vm1946_vm7, %v2317_v5  ;;  %2893 = vst [vmem:[%s3667_s7 + $0x74] sm:$0x1] %v2550_v35  ;;  %v2337_v39 = vshrl.u32 %v2951_v32, 16  ;;  %v2952_v15 = vpack.c.bf16 %v1935_v33, %v1935_v33  ;;  %v3153_v18 = vadd.f32 %v4006_v11, %v3083_v56  ;;  %v3154_v19 = vadd.f32 %v4008_v16, %v1602_v6 }
 0x1c8   : > { %v4029_v62 = vpop.f32.mrb[29].mxu0  ;;  %v2340_v10 = vshll.u32 %v2951_v32, 16  ;;  %v2356_v22 = vrot.slane %v2354_v8, 7  ;;  %v3155_v24 = vadd.f32 %v4012_v25, %v3084_v40  ;;  %v3156_v26 = vadd.f32 %v1847_v30, %v1605_v20  ;;  %v3087_v53 = vpop.f32.mrb[28].mxu1 }
 0x1c9   : > { %v4039_v7 = vpop.f32.mrb[30].mxu0  ;;  %v2339_v36 = vrot.slane %v2337_v39, 7  ;;  %v2362_v28 = vshrl.u32 %v2954_v13, 16  ;;  %v2365_v37 = vshll.u32 %v2954_v13, 16  ;;  %v2345_v29 = vshrl.u32 %v2952_v15, 16  ;;  %v1618_v55 = vpop.f32.mrb[29].mxu1 }
 0x1ca   : > { %v4047_v12 = vpop.f32.mrb[31].mxu0  ;;  %v2348_v31 = vshll.u32 %v2952_v15, 16  ;;  %v2359_v41 = vor.u32 %v2357_v9, %v2356_v22  ;;  %v2360_v11 = vrot.slane %v2356_v22, 4  ;;  %v1940_v47 = vadd.f32 %v3153_v18, %v3856_v42  ;;  %v3088_v61 = vpop.f32.mrb[30].mxu1  ;;  %v2914_v15 = vld [vmem:[%s3667_s7 + $0xa8] sm:$0xf] }
 0x1cb   : > { %v2342_v43 = vor.u32 %v2340_v10, %v2339_v36  ;;  %v2343_v16 = vrot.slane %v2339_v36, 4  ;;  %v2364_v44 = vrot.slane %v2362_v28, 7  ;;  %v2347_v45 = vrot.slane %v2345_v29, 7  ;;  %v1621_v33 = vpop.f32.mrb[31].mxu1  ;;  %v2909_v18 = vld [vmem:[%s3667_s7 + $0x9c] sm:$0xf] }
 0x1cc   : > { %v1938_v25 = vadd.f32 %v3154_v19, %v3856_v42  ;;  %v2567_v30 = vsel %vm3864_vm14, %v2359_v41, %v2904_v23  ;;  %v1941_v50 = vadd.f32 %v3155_v24, %v3856_v42  ;;  %v1939_v51 = vadd.f32 %v3156_v26, %v3856_v42  ;;  %v2917_v28 = vld [vmem:[%s3667_s7 + $0xb0] sm:$0x1] }
 0x1cd   : > { %v2560_v46 = vsel %vm3864_vm14, %v2342_v43, %v2899_v27  ;;  %2905 = vst [vmem:[%s3667_s7 + $0x90] sm:$0xf] %v2567_v30  ;;  %v2367_v52 = vor.u32 %v2365_v37, %v2364_v44  ;;  %v2369_v17 = vrot.slane %v2364_v44, 4  ;;  %v2350_v38 = vor.u32 %v2348_v31, %v2347_v45  ;;  %v2912_v37 = vld [vmem:[%s3667_s7 + $0xa4] sm:$0x1] }
 0x1ce   : > { %2900 = vst [vmem:[%s3667_s7 + $0x84] sm:$0xf] %v2560_v46  ;;  %v2352_v54 = vrot.slane %v2347_v45, 4  ;;  %v2957_v57 = vpack.c.bf16 %v1940_v47, %v1940_v47  ;;  %v2955_v58 = vpack.c.bf16 %v1938_v25, %v1938_v25  ;;  %v2958_v59 = vpack.c.bf16 %v1941_v50, %v1941_v50 }
 0x1cf   : > { %v2956_v60 = vpack.c.bf16 %v1939_v51, %v1939_v51  ;;  %v2368_v63 = vsel %vm3873_vm15, %v2360_v11, %v2367_v52  ;;  %v2571_v1 = vsel %vm3680_vm10, %v2369_v17, %v2907_v48  ;;  %v2351_v32 = vsel %vm3873_vm15, %v2343_v16, %v2350_v38 }
 0x1d0   : > { %v2564_v2 = vsel %vm3680_vm10, %v2352_v54, %v2902_v49  ;;  %2906 = vst.msk [vmem:[%s3667_s7 + $0x94] sm:$0xf] %vm1946_vm7, %v2368_v63  ;;  %2908 = vst [vmem:[%s3667_s7 + $0x98] sm:$0x1] %v2571_v1  ;;  %v2388_v56 = vshrl.u32 %v2957_v57, 16  ;;  %v2391_v3 = vshll.u32 %v2957_v57, 16  ;;  %v3157_v40 = vadd.f32 %v4025_v0, %v3087_v53 }
 0x1d1   : > { %2901 = vst.msk [vmem:[%s3667_s7 + $0x88] sm:$0xf] %vm1946_vm7, %v2351_v32  ;;  %2903 = vst [vmem:[%s3667_s7 + $0x8c] sm:$0x1] %v2564_v2  ;;  %v2371_v34 = vshrl.u32 %v2955_v58, 16  ;;  %v2374_v5 = vshll.u32 %v2955_v58, 16  ;;  %v3158_v13 = vadd.f32 %v4029_v62, %v1618_v55  ;;  %v3159_v22 = vadd.f32 %v4039_v7, %v3088_v61 }
 0x1d2   : > { %v2396_v35 = vshrl.u32 %v2958_v59, 16  ;;  %v2399_v6 = vshll.u32 %v2958_v59, 16  ;;  %v2379_v8 = vshrl.u32 %v2956_v60, 16  ;;  %v2382_v9 = vshll.u32 %v2956_v60, 16  ;;  %v2924_v54 = vld [vmem:[%s3667_s7 + $0xc0] sm:$0xf] }
 0x1d3   : > { %v2390_v39 = vrot.slane %v2388_v56, 7  ;;  %v2373_v10 = vrot.slane %v2371_v34, 7  ;;  %v3160_v23 = vadd.f32 %v4047_v12, %v1621_v33  ;;  %v1944_v41 = vadd.f32 %v3157_v40, %v3856_v42  ;;  %v2919_v55 = vld [vmem:[%s3667_s7 + $0xb4] sm:$0xf]  ;;  %v2922_v34 = vld [vmem:[%s3667_s7 + $0xbc] sm:$0x1] }
 0x1d4   : > { %v2398_v19 = vrot.slane %v2396_v35, 7  ;;  %v2381_v20 = vrot.slane %v2379_v8, 7  ;;  %v1942_v11 = vadd.f32 %v3158_v13, %v3856_v42  ;;  %v1945_v30 = vadd.f32 %v3159_v22, %v3856_v42 }
 0x1d5   : > { %v2393_v36 = vor.u32 %v2391_v3, %v2390_v39  ;;  %v2394_v24 = vrot.slane %v2390_v39, 4  ;;  %v2376_v26 = vor.u32 %v2374_v5, %v2373_v10  ;;  %v2377_v27 = vrot.slane %v2373_v10, 4  ;;  %v2927_v3 = vld [vmem:[%s3667_s7 + $0xc8] sm:$0x1] }
 0x1d6   : > { %v2401_v0 = vor.u32 %v2399_v6, %v2398_v19  ;;  %v2403_v62 = vrot.slane %v2398_v19, 4  ;;  %v2384_v29 = vor.u32 %v2382_v9, %v2381_v20  ;;  %v2386_v31 = vrot.slane %v2381_v20, 4 }
 0x1d7   : > { %v2581_v7 = vsel %vm3864_vm14, %v2393_v36, %v2914_v15  ;;  %v2574_v12 = vsel %vm3864_vm14, %v2376_v26, %v2909_v18  ;;  %v2961_v47 = vpack.c.bf16 %v1944_v41, %v1944_v41  ;;  %v2959_v25 = vpack.c.bf16 %v1942_v11, %v1942_v11 }
 0x1d8   : > { %2915 = vst [vmem:[%s3667_s7 + $0xa8] sm:$0xf] %v2581_v7  ;;  %2910 = vst [vmem:[%s3667_s7 + $0x9c] sm:$0xf] %v2574_v12  ;;  %v2402_v43 = vsel %vm3873_vm15, %v2394_v24, %v2401_v0  ;;  %v2585_v16 = vsel %vm3680_vm10, %v2403_v62, %v2917_v28  ;;  %v2385_v44 = vsel %vm3873_vm15, %v2377_v27, %v2384_v29 }
 0x1d9   : > { %v2578_v45 = vsel %vm3680_vm10, %v2386_v31, %v2912_v37  ;;  %2916 = vst.msk [vmem:[%s3667_s7 + $0xac] sm:$0xf] %vm1946_vm7, %v2402_v43  ;;  %2918 = vst [vmem:[%s3667_s7 + $0xb0] sm:$0x1] %v2585_v16  ;;  %v1943_v46 = vadd.f32 %v3160_v23, %v3856_v42  ;;  %v2422_v48 = vshrl.u32 %v2961_v47, 16  ;;  %v2405_v49 = vshrl.u32 %v2959_v25, 16 }
 0x1da   : > { %2911 = vst.msk [vmem:[%s3667_s7 + $0xa0] sm:$0xf] %vm1946_vm7, %v2385_v44  ;;  %2913 = vst [vmem:[%s3667_s7 + $0xa4] sm:$0x1] %v2578_v45  ;;  %v2962_v50 = vpack.c.bf16 %v1945_v30, %v1945_v30  ;;  %v2425_v52 = vshll.u32 %v2961_v47, 16  ;;  %v2408_v38 = vshll.u32 %v2959_v25, 16 }
 0x1db   : > { %v2960_v51 = vpack.c.bf16 %v1943_v46, %v1943_v46  ;;  %v2424_v53 = vrot.slane %v2422_v48, 7  ;;  %v2407_v17 = vrot.slane %v2405_v49, 7 }
 0x1dc   : > { %v2430_v57 = vshrl.u32 %v2962_v50, 16  ;;  %v2433_v42 = vshll.u32 %v2962_v50, 16 }
 0x1dd   : > { %v2413_v58 = vshrl.u32 %v2960_v51, 16  ;;  %v2427_v59 = vor.u32 %v2425_v52, %v2424_v53  ;;  %v2410_v60 = vor.u32 %v2408_v38, %v2407_v17  ;;  %v2416_v1 = vshll.u32 %v2960_v51, 16 }
 0x1de   : > { %v2432_v61 = vrot.slane %v2430_v57, 7  ;;  %v2428_v32 = vrot.slane %v2424_v53, 4  ;;  %v2411_v33 = vrot.slane %v2407_v17, 4 }
 0x1df   : > { %v2415_v63 = vrot.slane %v2413_v58, 7  ;;  %v2595_v2 = vsel %vm3864_vm14, %v2427_v59, %v2924_v54  ;;  %v2588_v56 = vsel %vm3864_vm14, %v2410_v60, %v2919_v55 }
 0x1e0   : > { %2925 = vst [vmem:[%s3667_s7 + $0xc0] sm:$0xf] %v2595_v2  ;;  %2920 = vst [vmem:[%s3667_s7 + $0xb4] sm:$0xf] %v2588_v56  ;;  %v2435_v5 = vor.u32 %v2433_v42, %v2432_v61  ;;  %v2437_v35 = vrot.slane %v2432_v61, 4 }
 0x1e1   : > { %v2418_v6 = vor.u32 %v2416_v1, %v2415_v63  ;;  %v2420_v8 = vrot.slane %v2415_v63, 4 }
 0x1e2   : > { %v2436_v9 = vsel %vm3873_vm15, %v2428_v32, %v2435_v5  ;;  %v2599_v39 = vsel %vm3680_vm10, %v2437_v35, %v2927_v3 }
 0x1e3   : > { %v2419_v4 = vsel %vm3873_vm15, %v2411_v33, %v2418_v6  ;;  %v2592_v10 = vsel %vm3680_vm10, %v2420_v8, %v2922_v34  ;;  %2926 = vst.msk [vmem:[%s3667_s7 + $0xc4] sm:$0xf] %vm1946_vm7, %v2436_v9  ;;  %2928 = vst [vmem:[%s3667_s7 + $0xc8] sm:$0x1] %v2599_v39 }
 0x1e4   : > { %2921 = vst.msk [vmem:[%s3667_s7 + $0xb8] sm:$0xf] %vm1946_vm7, %v2419_v4  ;;  %2923 = vst [vmem:[%s3667_s7 + $0xbc] sm:$0x1] %v2592_v10 }
 0x1e5 PF: > { %s13_s12 = sadd.s32 1, %s3311_s12  }
 0x1e6   : > { %p10_p4 = scmp.ge.s32.totalorder %s13_s12, 4  }
 0x1e8   :  { %12 = sbr.rel (!%p10_p4) target bundleno = 1 (0x1), region = 68 }

</bundles_post_ra>
